<compile_context>
chip_gen: v5e
topology: v5e:2x2
jax: 0.10.0
libtpu: 0.0.40
codegen_flags: <defaults>
</compile_context>

<pallas_src>
import math

import jax
import jax.numpy as jnp
from jax.experimental import pallas as pl
from jax.experimental.pallas import tpu as pltpu


def _se_kernel(x_ref, w1t_ref, w2t_ref, pool_ref, bcast_ref, o_ref):
    """One grid step over a lane-dense (TB, C*L) slab.

    x_ref     : (TB, C*L)  native dtype (never materialized in f32)
    w1t_ref   : (C, C_r)   fc1 weight, transposed
    w2t_ref   : (C_r, C)   fc2 weight, transposed
    pool_ref  : (C*L, C)   block-structured 1/L matrix  -> per-channel mean
    bcast_ref : (C, C*L)   block-structured ones matrix -> broadcast over L
    o_ref     : (TB, C*L)
    """
    x = x_ref[...]                                       # (TB, C*L), native dtype

    # --- squeeze: per-channel mean over L as one MXU matmul, f32 accumulate ---
    y = jnp.dot(x, pool_ref[...],
                preferred_element_type=jnp.float32,
                precision=jax.lax.Precision.HIGHEST)     # (TB, C)

    # --- excitation: Linear -> exact (erf) GELU -> Linear -> Sigmoid ---
    # (kept on the MXU: with batch-blocking M = TB rows, so the tiles are no
    #  longer M=1 degenerate; K/N are tiny but off the critical DMA path.)
    h = jnp.dot(y, w1t_ref[...], preferred_element_type=jnp.float32)    # (TB, C_r)
    h = 0.5 * h * (1.0 + jax.lax.erf(h * (1.0 / math.sqrt(2.0))))
    s = jnp.dot(h, w2t_ref[...], preferred_element_type=jnp.float32)    # (TB, C)
    s = jax.nn.sigmoid(s)

    # --- broadcast s over L (stays lane-dense) and scale in native dtype ---
    s_flat = jnp.dot(s, bcast_ref[...],
                     preferred_element_type=jnp.float32,
                     precision=jax.lax.Precision.HIGHEST)                # (TB, C*L)
    o_ref[...] = (x * s_flat.astype(x.dtype)).astype(o_ref.dtype)


def _choose_block_batch(B, CL, itemsize, target_block_bytes):
    """Pick block rows TB: ~target bytes of x per block, sublane-friendly,
    and >= 2 grid steps when the batch allows (v7x dual TensorCore)."""
    tb = max(1, target_block_bytes // (CL * itemsize))
    if B > 1:
        tb = min(tb, pl.cdiv(B, 2))      # keep at least 2 grid steps
    if tb >= B:
        return B                         # whole batch in one block
    if tb >= 8:
        return (tb // 8) * 8             # sublane-aligned block rows
    return min(8, B)                     # tiny batches: full batch or 8 rows


def se_module(x, w1, w2, *, block_batch=None, target_block_bytes=2 << 20):
    """x: (B, C, L); w1: (C//r, C); w2: (C, C//r) -- PyTorch nn.Linear (out, in) layout.

    target_block_bytes: per-block x footprint. ~2 MiB is safe on v7x (64 MiB
    VMEM, 2 cores); v5e/v6e (128 MiB VMEM) can use 4-8 MiB.
    """
    B, C, L = x.shape
    C_r = w1.shape[0]
    CL = C * L
    itemsize = jnp.dtype(x.dtype).itemsize

    # Lane-dense view: row-major (C, L) flatten is lane-contiguous, so the
    # kernel's last dim is C*L instead of L.
    x2 = x.reshape(B, CL)
    w1t = jnp.transpose(w1)                                        # (C, C_r)
    w2t = jnp.transpose(w2)                                        # (C_r, C)
    eye = jnp.eye(C, dtype=jnp.float32)
    pool_mat = (jnp.repeat(eye, L, axis=0) / L).astype(x.dtype)    # (C*L, C)
    bcast_mat = jnp.repeat(eye, L, axis=1)                         # (C, C*L), f32

    TB = block_batch if block_batch is not None else _choose_block_batch(
        B, CL, itemsize, target_block_bytes)
    grid = (pl.cdiv(B, TB),)

    # VMEM budget: double-buffered in + out blocks + resident weights/maps.
    block_bytes = TB * CL * itemsize
    aux_bytes = (w1t.size * w1t.dtype.itemsize + w2t.size * w2t.dtype.itemsize
                 + pool_mat.size * pool_mat.dtype.itemsize
                 + bcast_mat.size * bcast_mat.dtype.itemsize)
    vmem_limit = int(min(max(4 * block_bytes + 2 * aux_bytes + (2 << 20),
                             16 << 20), 64 << 20))

    cost = pl.CostEstimate(
        flops=int(2 * B * CL * C          # pooling matmul
                  + 4 * B * C * C_r       # two excitation matmuls
                  + 2 * B * C * CL        # broadcast matmul
                  + B * CL),              # final scale
        transcendentals=int(B * (C_r + C)),
        bytes_accessed=int(2 * B * CL * itemsize + aux_bytes),
    )

    out2 = pl.pallas_call(
        _se_kernel,
        out_shape=jax.ShapeDtypeStruct((B, CL), x.dtype),
        grid_spec=pltpu.PrefetchScalarGridSpec(
            num_scalar_prefetch=0,
            grid=grid,
            in_specs=[
                pl.BlockSpec((TB, CL), lambda b: (b, 0)),    # x slab (pipelined)
                pl.BlockSpec((C, C_r), lambda b: (0, 0)),    # resident weights
                pl.BlockSpec((C_r, C), lambda b: (0, 0)),
                pl.BlockSpec((CL, C), lambda b: (0, 0)),     # pooling map
                pl.BlockSpec((C, CL), lambda b: (0, 0)),     # broadcast map
            ],
            out_specs=pl.BlockSpec((TB, CL), lambda b: (b, 0)),
        ),
        compiler_params=pltpu.CompilerParams(
            dimension_semantics=("parallel",),
            vmem_limit_bytes=vmem_limit,
        ),
        cost_estimate=cost,
    )(x2, w1t, w2t, pool_mat, bcast_mat)

    return out2.reshape(B, C, L)


if __name__ == "__main__":
    B, C, L = 2, 16, 32
    reduction = 4
    C_r = C // reduction

    key = jax.random.PRNGKey(0)
    kx, k1, k2 = jax.random.split(key, 3)

    x = jax.random.normal(kx, (B, C, L), dtype=jnp.float32)
    # Deterministic weight init (Kaiming-uniform-ish bounds like nn.Linear).
    bound1 = 1.0 / math.sqrt(C)
    bound2 = 1.0 / math.sqrt(C_r)
    w1 = jax.random.uniform(k1, (C_r, C), minval=-bound1, maxval=bound1, dtype=jnp.float32)
    w2 = jax.random.uniform(k2, (C, C_r), minval=-bound2, maxval=bound2, dtype=jnp.float32)

    out = se_module(x, w1, w2)
    jax.block_until_ready(out)

    # Pure-JAX reference of the same math.
    y_ref = jnp.mean(x, axis=2)
    h_ref = y_ref @ w1.T
    h_ref = 0.5 * h_ref * (1.0 + jax.lax.erf(h_ref / math.sqrt(2.0)))
    s_ref = jax.nn.sigmoid(h_ref @ w2.T)
    ref = x * s_ref[:, :, None]

    # Tolerance is set to also cover the case where the compiler lowers the f32
    # pooling/broadcast matmuls with reduced-precision (bf16-pass) MXU passes;
    # with Precision.HIGHEST honored the error is ~1e-6.
    assert jnp.allclose(out, ref, atol=2e-2, rtol=2e-2)

    print("KERNEL_OK")
</pallas_src>

<mosaic_0001>
module attributes {stable_mosaic.version = 11 : i64} {
  func.func @_se_kernel(%arg0: i32, %arg1: memref<2x512xf32, #tpu.memory_space<vmem>>, %arg2: memref<16x4xf32, #tpu.memory_space<vmem>>, %arg3: memref<4x16xf32, #tpu.memory_space<vmem>>, %arg4: memref<512x16xf32, #tpu.memory_space<vmem>>, %arg5: memref<16x512xf32, #tpu.memory_space<vmem>>, %arg6: memref<2x512xf32, #tpu.memory_space<vmem>>) attributes {dimension_semantics = [#tpu.dimension_semantics<parallel>], iteration_bounds = array<i64: 1>, scalar_prefetch = 0 : i64, scratch_operands = 0 : i64, tpu.core_type = #tpu.core_type<tc>, window_params = [{transform_indices = @transform_0, window_bounds = array<i64: 2, 512>}, {pipeline_mode = #tpu.pipeline_mode<synchronous>, transform_indices = @transform_1, window_bounds = array<i64: 16, 4>}, {pipeline_mode = #tpu.pipeline_mode<synchronous>, transform_indices = @transform_2, window_bounds = array<i64: 4, 16>}, {pipeline_mode = #tpu.pipeline_mode<synchronous>, transform_indices = @transform_3, window_bounds = array<i64: 512, 16>}, {pipeline_mode = #tpu.pipeline_mode<synchronous>, transform_indices = @transform_4, window_bounds = array<i64: 16, 512>}, {transform_indices = @transform_5, window_bounds = array<i64: 2, 512>}]} {
    %c0 = arith.constant 0 : index
    %c0_0 = arith.constant 0 : index
    %0 = vector.load %arg1[%c0, %c0_0] : memref<2x512xf32, #tpu.memory_space<vmem>>, vector<2x512xf32>
    %c0_1 = arith.constant 0 : index
    %c0_2 = arith.constant 0 : index
    %1 = vector.load %arg4[%c0_1, %c0_2] : memref<512x16xf32, #tpu.memory_space<vmem>>, vector<512x16xf32>
    %cst = arith.constant dense<0.000000e+00> : vector<2x16xf32>
    %2 = tpu.matmul %0, %1, %cst {dimension_numbers = #tpu.dot_dimension_numbers<[1], [0], [0], [1], [0, 0, 1, 1], [], []>, precision = #tpu.contract_precision<fp32>} : vector<2x512xf32>, vector<512x16xf32>, vector<2x16xf32> -> vector<2x16xf32>
    %c0_3 = arith.constant 0 : index
    %c0_4 = arith.constant 0 : index
    %3 = vector.load %arg2[%c0_3, %c0_4] : memref<16x4xf32, #tpu.memory_space<vmem>>, vector<16x4xf32>
    %cst_5 = arith.constant dense<0.000000e+00> : vector<2x4xf32>
    %4 = tpu.matmul %2, %3, %cst_5 {dimension_numbers = #tpu.dot_dimension_numbers<[1], [0], [0], [1], [0, 0, 1, 1], [], []>} : vector<2x16xf32>, vector<16x4xf32>, vector<2x4xf32> -> vector<2x4xf32>
    %cst_6 = arith.constant 5.000000e-01 : f32
    %5 = vector.broadcast %cst_6 : f32 to vector<2x4xf32>
    %6 = arith.mulf %5, %4 : vector<2x4xf32>
    %cst_7 = arith.constant 0.707106769 : f32
    %7 = vector.broadcast %cst_7 : f32 to vector<2x4xf32>
    %8 = arith.mulf %4, %7 : vector<2x4xf32>
    %9 = math.erf %8 : vector<2x4xf32>
    %cst_8 = arith.constant 1.000000e+00 : f32
    %10 = vector.broadcast %cst_8 : f32 to vector<2x4xf32>
    %11 = arith.addf %10, %9 : vector<2x4xf32>
    %12 = arith.mulf %6, %11 : vector<2x4xf32>
    %c0_9 = arith.constant 0 : index
    %c0_10 = arith.constant 0 : index
    %13 = vector.load %arg3[%c0_9, %c0_10] : memref<4x16xf32, #tpu.memory_space<vmem>>, vector<4x16xf32>
    %cst_11 = arith.constant dense<0.000000e+00> : vector<2x16xf32>
    %14 = tpu.matmul %12, %13, %cst_11 {dimension_numbers = #tpu.dot_dimension_numbers<[1], [0], [0], [1], [0, 0, 1, 1], [], []>} : vector<2x4xf32>, vector<4x16xf32>, vector<2x16xf32> -> vector<2x16xf32>
    %15 = arith.negf %14 : vector<2x16xf32>
    %16 = math.exp %15 : vector<2x16xf32>
    %cst_12 = arith.constant 1.000000e+00 : f32
    %17 = vector.broadcast %cst_12 : f32 to vector<2x16xf32>
    %18 = arith.addf %17, %16 : vector<2x16xf32>
    %19 = arith.divf %17, %18 : vector<2x16xf32>
    %c0_13 = arith.constant 0 : index
    %c0_14 = arith.constant 0 : index
    %20 = vector.load %arg5[%c0_13, %c0_14] : memref<16x512xf32, #tpu.memory_space<vmem>>, vector<16x512xf32>
    %cst_15 = arith.constant dense<0.000000e+00> : vector<2x512xf32>
    %21 = tpu.matmul %19, %20, %cst_15 {dimension_numbers = #tpu.dot_dimension_numbers<[1], [0], [0], [1], [0, 0, 1, 1], [], []>, precision = #tpu.contract_precision<fp32>} : vector<2x16xf32>, vector<16x512xf32>, vector<2x512xf32> -> vector<2x512xf32>
    %22 = arith.mulf %0, %21 : vector<2x512xf32>
    %c0_16 = arith.constant 0 : index
    %c0_17 = arith.constant 0 : index
    %23 = vector.load %arg6[%c0_16, %c0_17] : memref<2x512xf32, #tpu.memory_space<vmem>>, vector<2x512xf32>
    tpu.vector_store %arg6[%c0_16, %c0_17], %22 {strides = array<i32>} : memref<2x512xf32, #tpu.memory_space<vmem>>, vector<2x512xf32>,
    return
  }
  func.func @transform_0(%arg0: i32) -> (i32, i32) {
    %c0_i32 = arith.constant 0 : i32
    %c0_i32_0 = arith.constant 0 : i32
    return %arg0, %c0_i32 : i32, i32
  }
  func.func @transform_1(%arg0: i32) -> (i32, i32) {
    %c0_i32 = arith.constant 0 : i32
    %c0_i32_0 = arith.constant 0 : i32
    %c0_i32_1 = arith.constant 0 : i32
    return %c0_i32, %c0_i32_0 : i32, i32
  }
  func.func @transform_2(%arg0: i32) -> (i32, i32) {
    %c0_i32 = arith.constant 0 : i32
    %c0_i32_0 = arith.constant 0 : i32
    %c0_i32_1 = arith.constant 0 : i32
    return %c0_i32, %c0_i32_0 : i32, i32
  }
  func.func @transform_3(%arg0: i32) -> (i32, i32) {
    %c0_i32 = arith.constant 0 : i32
    %c0_i32_0 = arith.constant 0 : i32
    %c0_i32_1 = arith.constant 0 : i32
    return %c0_i32, %c0_i32_0 : i32, i32
  }
  func.func @transform_4(%arg0: i32) -> (i32, i32) {
    %c0_i32 = arith.constant 0 : i32
    %c0_i32_0 = arith.constant 0 : i32
    %c0_i32_1 = arith.constant 0 : i32
    return %c0_i32, %c0_i32_0 : i32, i32
  }
  func.func @transform_5(%arg0: i32) -> (i32, i32) {
    %c0_i32 = arith.constant 0 : i32
    %c0_i32_0 = arith.constant 0 : i32
    return %arg0, %c0_i32 : i32, i32
  }
}

</mosaic_0001>

<bundles_post_ra>
// kernel: tpu_custom_call.1
= control target key start
LH: loop header
LB: loop body
LE: loop exit
PB: predicated region body
PF: predicated region fallthrough
CT: control target
= control target key end

     0   :  { %s3630_s0 = inlined_call_operand.vmem [shape: f32[2,512], index: 0, kind: input, shape index: {}]   ;;  %s3631_s1 = inlined_call_operand.vmem [shape: f32[16,4], index: 1, kind: input, shape index: {}]   ;;  %s3632_s2 = inlined_call_operand.vmem [shape: f32[4,16], index: 2, kind: input, shape index: {}]   ;;  %s3633_s3 = inlined_call_operand.vmem [shape: f32[512,16], index: 3, kind: input, shape index: {}]   ;;  %s3634_s4 = inlined_call_operand.vmem [shape: f32[16,512], index: 4, kind: input, shape index: {}]   ;;  %s3635_s5 = inlined_call_operand.hbm [shape: f32[2,512], index: 5, kind: output, shape index: {}]  }
   0x1   :  { %v37_v0 = vld [vmem:[%s3633_s3 + $0x78] sm:$0xff]  ;;  %v36_v1 = vld [vmem:[%s3633_s3 + $0x70] sm:$0xff]  ;;  %v35_v2 = vld [vmem:[%s3633_s3 + $0x68] sm:$0xff] }
   0x2   :  { %v2334_v3 = vand.u32 4294901760, %v37_v0  ;;  %v2336_v4 = vand.u32 4294901760, %v36_v1  ;;  %v2338_v5 = vand.u32 4294901760, %v35_v2  ;;  %v34_v6 = vld [vmem:[%s3633_s3 + $0x60] sm:$0xff]  ;;  %v33_v7 = vld [vmem:[%s3633_s3 + $0x58] sm:$0xff]  ;;  %v32_v8 = vld [vmem:[%s3633_s3 + $0x50] sm:$0xff] }
   0x3   :  { %v2349_v9 = vand.u32 4294901760, %v34_v6  ;;  %v2351_v10 = vand.u32 4294901760, %v33_v7  ;;  %v2353_v11 = vand.u32 4294901760, %v32_v8  ;;  %v31_v12 = vld [vmem:[%s3633_s3 + $0x48] sm:$0xff]  ;;  %v30_v13 = vld [vmem:[%s3633_s3 + $0x40] sm:$0xff]  ;;  %v29_v18 = vld [vmem:[%s3633_s3 + $0x38] sm:$0xff] }
   0x4   :  { %97 = vmatpush.msra.mxu0 %v2334_v3  ;;  %v2363_v14 = vsub.f32 %v37_v0, %v2334_v3  ;;  %v2366_v15 = vsub.f32 %v36_v1, %v2336_v4  ;;  %293 = vmatpush.msra.mxu3 %v2334_v3  ;;  %v2370_v16 = vsub.f32 %v35_v2, %v2338_v5  ;;  %v2372_v17 = vand.u32 4294901760, %v31_v12  ;;  %v28_v26 = vld [vmem:[%s3633_s3 + $0x30] sm:$0xff]  ;;  %v27_v34 = vld [vmem:[%s3633_s3 + $0x28] sm:$0xff] }
   0x5   :  { %v2378_v19 = vsub.f32 %v34_v6, %v2349_v9  ;;  %v2381_v20 = vsub.f32 %v33_v7, %v2351_v10  ;;  %v2384_v21 = vsub.f32 %v32_v8, %v2353_v11  ;;  %v2391_v25 = vand.u32 4294901760, %v30_v13 }
   0x6   :  { %99 = vmatpush.msra.mxu0 %v2336_v4  ;;  %240 = vmatpush.msra.mxu2 %v2363_v14  ;;  %v139_v22 = vand.u32 4294901760, %v2363_v14  ;;  %v3650_v23 = vand.u32 4294901760, %v2366_v15  ;;  %v3648_v24 = vand.u32 4294901760, %v2370_v16  ;;  %v2398_v28 = vand.u32 4294901760, %v29_v18 }
   0x7   :  { %295 = vmatpush.msra.mxu3 %v2336_v4  ;;  %v3646_v27 = vand.u32 4294901760, %v2378_v19  ;;  %v2401_v29 = vsub.f32 %v31_v12, %v2372_v17  ;;  %v3645_v33 = vand.u32 4294901760, %v2381_v20 }
   0x8   :  { %101 = vmatpush.msra.mxu0 %v2338_v5  ;;  %243 = vmatpush.msra.mxu2 %v2366_v15  ;;  %v140_v30 = vsub.f32 %v2363_v14, %v139_v22  ;;  %v146_v31 = vsub.f32 %v2366_v15, %v3650_v23  ;;  %v152_v32 = vsub.f32 %v2370_v16, %v3648_v24 }
   0x9   :  { %10 = vsyncpa [#allocation3], 0  ;;  %297 = vmatpush.msra.mxu3 %v2338_v5  ;;  %v2419_v35 = vand.u32 4294901760, %v28_v26  ;;  %v3643_v36 = vand.u32 4294901760, %v2384_v21  ;;  %v158_v39 = vsub.f32 %v2378_v19, %v3646_v27  ;;  %v2428_v40 = vsub.f32 %v30_v13, %v2391_v25  ;;  %v26_v42 = vld [vmem:[%s3633_s3 + $0x20] sm:$0xff]  ;;  %v25_v48 = vld [vmem:[%s3633_s3 + $0x18] sm:$0xff] }
   0xa   :  { %103 = vmatpush.msra.mxu0 %v2349_v9  ;;  %v141_v37 = vand.u32 4294901760, %v140_v30  ;;  %246 = vmatpush.msra.mxu2 %v2370_v16  ;;  %v147_v38 = vand.u32 4294901760, %v146_v31  ;;  %v2431_v41 = vand.u32 4294901760, %v27_v34  ;;  %v153_v43 = vand.u32 4294901760, %v152_v32  ;;  %v24_v54 = vld [vmem:[%s3633_s3 + $0x10] sm:$0xff]  ;;  %v2470_v55 = vld [vmem:[%s3630_s0] sm:$0xff] }
   0xb   :  { %299 = vmatpush.msra.mxu3 %v2349_v9  ;;  %v164_v44 = vsub.f32 %v2381_v20, %v3645_v33  ;;  %v3642_v45 = vand.u32 4294901760, %v2401_v29  ;;  %v2442_v46 = vsub.f32 %v29_v18, %v2398_v28  ;;  %v170_v47 = vsub.f32 %v2384_v21, %v3643_v36  ;;  %3681 = vst [vmem:[#allocation5_spill] sm:$0xff] %v2470_v55  ;;  %v53_v60 = vld [vmem:[%s3633_s3 + $0xf8] sm:$0xff]  ;;  %v23_v62 = vld [vmem:[%s3633_s3 + $0x8] sm:$0xff]  ;;  %v22_v6 = vld [vmem:[%s3633_s3] sm:$0xff]  ;;  %s2247_s15 = sshll.u32 %s3635_s5, 4  ;;  %s2248_s15 = int_to_ptr.hbm [resolvable:$true] %s2247_s15 }
   0xc   :  { %105 = vmatpush.msra.mxu0 %v2351_v10  ;;  %142 = vmatpush.msra.mxu1 %v141_v37  ;;  %v159_v49 = vand.u32 4294901760, %v158_v39  ;;  %v2453_v50 = vand.u32 4294901760, %v26_v42  ;;  %v3641_v51 = vand.u32 4294901760, %v2428_v40  ;;  %v2457_v52 = vsub.f32 %v28_v26, %v2419_v35  ;;  %87 = vst [vmem:[#allocation1] ss:$4 sm:$0xff] %v2470_v55  ;;  %v52_v7 = vld [vmem:[%s3633_s3 + $0xf0] sm:$0xff] }
   0xd   :  { %249 = vmatpush.msra.mxu2 %v2378_v19  ;;  %301 = vmatpush.msra.mxu3 %v2351_v10  ;;  %v2462_v53 = vsub.f32 %v27_v34, %v2431_v41  ;;  %v165_v56 = vand.u32 4294901760, %v164_v44  ;;  %v176_v57 = vsub.f32 %v2401_v29, %v3642_v45  ;;  %v2476_v58 = vand.u32 4294901760, %v25_v48  ;;  %v51_v34 = vld [vmem:[%s3633_s3 + $0xe8] sm:$0xff]  ;;  %v46_v36 = vld [vmem:[%s3633_s3 + $0xc0] sm:$0xff] }
   0xe   :  { %107 = vmatpush.msra.mxu0 %v2353_v11  ;;  %148 = vmatpush.msra.mxu1 %v147_v38  ;;  %v3639_v59 = vand.u32 4294901760, %v2442_v46  ;;  %v171_v61 = vand.u32 4294901760, %v170_v47  ;;  %v182_v63 = vsub.f32 %v2428_v40, %v3641_v51  ;;  %v2492_v0 = vand.u32 4294901760, %v24_v54  ;;  %v50_v47 = vld [vmem:[%s3633_s3 + $0xe0] sm:$0xff] }
   0xf   :  { %252 = vmatpush.msra.mxu2 %v2381_v20  ;;  %303 = vmatpush.msra.mxu3 %v2353_v11  ;;  %v3638_v1 = vand.u32 4294901760, %v2457_v52  ;;  %v2496_v2 = vsub.f32 %v26_v42, %v2453_v50  ;;  %v3637_v8 = vand.u32 4294901760, %v2462_v53  ;;  %v2507_v12 = vand.u32 4294901760, %v53_v60 }
  0x10   :  { %109 = vmatpush.msra.mxu0 %v2372_v17  ;;  %154 = vmatpush.msra.mxu1 %v153_v43  ;;  %v177_v13 = vand.u32 4294901760, %v176_v57  ;;  %v188_v18 = vsub.f32 %v2442_v46, %v3639_v59  ;;  %v2513_v26 = vand.u32 4294901760, %v23_v62  ;;  %v2516_v30 = vsub.f32 %v25_v48, %v2476_v58 }
  0x11   :  { %255 = vmatpush.msra.mxu2 %v2384_v21  ;;  %305 = vmatpush.msra.mxu3 %v2372_v17  ;;  %v2520_v31 = vand.u32 4294901760, %v22_v6  ;;  %v2522_v32 = vand.u32 4294901760, %v52_v7  ;;  %v183_v37 = vand.u32 4294901760, %v182_v63  ;;  %v194_v38 = vsub.f32 %v2457_v52, %v3638_v1  ;;  %v47_v1 = vld [vmem:[%s3633_s3 + $0xc8] sm:$0xff] }
  0x12   :  { %111 = vmatpush.msra.mxu0 %v2391_v25  ;;  %160 = vmatpush.msra.mxu1 %v159_v49  ;;  %v3636_v39 = vand.u32 4294901760, %v2496_v2  ;;  %v2533_v42 = vsub.f32 %v24_v54, %v2492_v0  ;;  %v200_v43 = vsub.f32 %v2462_v53, %v3637_v8  ;;  %v2541_v44 = vsub.f32 %v53_v60, %v2507_v12 }
  0x13   :  { %258 = vmatpush.msra.mxu2 %v2401_v29  ;;  %307 = vmatpush.msra.mxu3 %v2391_v25  ;;  %v189_v48 = vand.u32 4294901760, %v188_v18  ;;  %v3640_v49 = vand.u32 4294901760, %v2516_v30  ;;  %v2549_v54 = vsub.f32 %v23_v62, %v2513_v26  ;;  %v2556_v57 = vsub.f32 %v22_v6, %v2520_v31 }
  0x14   :  { %113 = vmatpush.msra.mxu0 %v2398_v28  ;;  %166 = vmatpush.msra.mxu1 %v165_v56  ;;  %v2551_v56 = vand.u32 4294901760, %v51_v34  ;;  %v2559_v60 = vsub.f32 %v52_v7, %v2522_v32  ;;  %v195_v62 = vand.u32 4294901760, %v194_v38  ;;  %v206_v63 = vsub.f32 %v2496_v2, %v3636_v39 }
  0x15   :  { %261 = vmatpush.msra.mxu2 %v2428_v40  ;;  %309 = vmatpush.msra.mxu3 %v2398_v28  ;;  %v2569_v18 = vand.u32 4294901760, %v50_v47  ;;  %v201_v6 = vand.u32 4294901760, %v200_v43  ;;  %v3647_v7 = vand.u32 4294901760, %v2541_v44  ;;  %v212_v38 = vsub.f32 %v2516_v30, %v3640_v49 }
  0x16   :  { %115 = vmatpush.msra.mxu0 %v2419_v35  ;;  %172 = vmatpush.msra.mxu1 %v171_v61  ;;  %3682 = vst [vmem:[#allocation6_spill] sm:$0xff] %v2551_v56  ;;  %v49_v61 = vld [vmem:[%s3633_s3 + $0xd8] sm:$0xff]  ;;  %v3649_v39 = vand.u32 4294901760, %v2549_v54  ;;  %v2583_v8 = vsub.f32 %v51_v34, %v2551_v56  ;;  %v3651_v59 = vand.u32 4294901760, %v2559_v60  ;;  %v207_v49 = vand.u32 4294901760, %v206_v63 }
  0x17   :  { %264 = vmatpush.msra.mxu2 %v2442_v46  ;;  %311 = vmatpush.msra.mxu3 %v2419_v35  ;;  %v2585_v43 = vand.u32 4294901760, %v49_v61  ;;  %v2599_v51 = vsub.f32 %v50_v47, %v2569_v18  ;;  %v2611_v63 = vand.u32 4294901760, %v47_v1  ;;  %v213_v47 = vand.u32 4294901760, %v212_v38 }
  0x18   :  { %117 = vmatpush.msra.mxu0 %v2431_v41  ;;  %178 = vmatpush.msra.mxu1 %v177_v13  ;;  %v3644_v13 = vand.u32 4294901760, %v2533_v42  ;;  %v2626_v24 = vand.u32 4294901760, %v46_v36  ;;  %vm1462_vm0 = vcmask 130048   ;;  %vm1535_vm1 = vcmask 1043456  }
  0x19   :  { %267 = vmatpush.msra.mxu2 %v2457_v52  ;;  %313 = vmatpush.msra.mxu3 %v2431_v41  ;;  %v2619_v27 = vsub.f32 %v49_v61, %v2585_v43  ;;  %v2643_v33 = vsub.f32 %v47_v1, %v2611_v63  ;;  %vm1531_vm6 = vcmask 31744   ;;  %vm2232_vm11 = vcmask 1041408  }
  0x1a   :  { %119 = vmatpush.msra.mxu0 %v2453_v50  ;;  %184 = vmatpush.msra.mxu1 %v183_v37  ;;  %v48_v37 = vld [vmem:[%s3633_s3 + $0xd0] sm:$0xff]  ;;  %v218_v34 = vsub.f32 %v2533_v42, %v3644_v13  ;;  %v224_v13 = vsub.f32 %v2549_v54, %v3649_v39  ;;  %v2659_v39 = vsub.f32 %v46_v36, %v2626_v24  ;;  %vm2234_vm12 = vcmask 1045508  }
  0x1b   :  { %270 = vmatpush.msra.mxu2 %v2462_v53  ;;  %315 = vmatpush.msra.mxu3 %v2453_v50  ;;  %v2601_v45 = vand.u32 4294901760, %v48_v37 }
  0x1c   :  { %121 = vmatpush.msra.mxu0 %v2476_v58  ;;  %190 = vmatpush.msra.mxu1 %v189_v48  ;;  %v3652_v48 = vand.u32 4294901760, %v2556_v57  ;;  %v219_v38 = vand.u32 4294901760, %v218_v34  ;;  %v225_v34 = vand.u32 4294901760, %v224_v13  ;;  %v43_v13 = vld [vmem:[%s3633_s3 + $0xa8] sm:$0xff] }
  0x1d   :  { %273 = vmatpush.msra.mxu2 %v2496_v2  ;;  %317 = vmatpush.msra.mxu3 %v2476_v58  ;;  %v2637_v23 = vsub.f32 %v48_v37, %v2601_v45  ;;  %v3683_v37 = vand.u32 4294901760, %v2583_v8 }
  0x1e   :  { %123 = vmatpush.msra.mxu0 %v2492_v0  ;;  %196 = vmatpush.msra.mxu1 %v195_v62  ;;  %v481_v62 = vsub.f32 %v2541_v44, %v3647_v7  ;;  %v487_v7 = vsub.f32 %v2559_v60, %v3651_v59  ;;  %v230_v61 = vsub.f32 %v2556_v57, %v3652_v48 }
  0x1f   :  { %276 = vmatpush.msra.mxu2 %v2516_v30  ;;  %319 = vmatpush.msra.mxu3 %v2492_v0  ;;  %v493_v48 = vsub.f32 %v2583_v8, %v3683_v37  ;;  %v3685_v37 = vand.u32 4294901760, %v2599_v51 }
  0x20   :  { %125 = vmatpush.msra.mxu0 %v2513_v26  ;;  %202 = vmatpush.msra.mxu1 %v201_v6  ;;  %v45_v6 = vld [vmem:[%s3633_s3 + $0xb8] sm:$0xff]  ;;  %v482_v59 = vand.u32 4294901760, %v481_v62  ;;  %v3684_v62 = vand.u32 4294901760, %v2366_v15  ;;  %v488_v1 = vand.u32 4294901760, %v487_v7  ;;  %v3686_v7 = vand.u32 4294901760, %v2370_v16 }
  0x21   :  { %279 = vmatpush.msra.mxu2 %v2533_v42  ;;  %321 = vmatpush.msra.mxu3 %v2513_v26  ;;  %v499_v14 = vsub.f32 %v2599_v51, %v3685_v37  ;;  %v3687_v37 = vand.u32 4294901760, %v2619_v27  ;;  %v2684_v16 = vand.u32 4294901760, %v43_v13 }
  0x22   :  { %127 = vmatpush.msra.mxu0 %v2520_v31  ;;  %208 = vmatpush.msra.mxu1 %v207_v49  ;;  %v44_v49 = vld [vmem:[%s3633_s3 + $0xb0] sm:$0xff] }
  0x23   :  { %282 = vmatpush.msra.mxu2 %v2549_v54  ;;  %323 = vmatpush.msra.mxu3 %v2520_v31  ;;  %v505_v15 = vsub.f32 %v2619_v27, %v3687_v37  ;;  %v3689_v37 = vand.u32 4294901760, %v2637_v23 }
  0x24   :  { %334 = vmatpush.msrb.mxu0 %v139_v22  ;;  %214 = vmatpush.msra.mxu1 %v213_v47  ;;  %v2653_v22 = vand.u32 4294901760, %v45_v6  ;;  %v231_v47 = vand.u32 4294901760, %v230_v61  ;;  %v494_v61 = vand.u32 4294901760, %v493_v48  ;;  %v500_v48 = vand.u32 4294901760, %v499_v14 }
  0x25   :  { %285 = vmatpush.msra.mxu2 %v2556_v57  ;;  %483 = vmatpush.msrb.mxu3 %v482_v59  ;;  %v3688_v59 = vand.u32 4294901760, %v2378_v19  ;;  %v506_v14 = vand.u32 4294901760, %v505_v15  ;;  %v40_v15 = vld [vmem:[%s3633_s3 + $0x90] sm:$0xff] }
  0x26   :  { %338 = vmatpush.msrb.mxu0 %v3684_v62  ;;  %220 = vmatpush.msra.mxu1 %v219_v38  ;;  %v2669_v62 = vand.u32 4294901760, %v44_v49  ;;  %v42_v38 = vld [vmem:[%s3633_s3 + $0xa0] sm:$0xff]  ;;  %v2682_v55 = vsub.f32 %v45_v6, %v2653_v22  ;;  %v511_v6 = vsub.f32 %v2637_v23, %v3689_v37 }
  0x27   :  { %438 = vmatpush.msrb.mxu2 %v2507_v12  ;;  %489 = vmatpush.msrb.mxu3 %v488_v1  ;;  %v2699_v19 = vand.u32 4294901760, %v42_v38  ;;  %v3690_v1 = vand.u32 4294901760, %v2381_v20  ;;  %v3692_v20 = vand.u32 4294901760, %v2384_v21 }
  0x28   :  { %342 = vmatpush.msrb.mxu0 %v3686_v7  ;;  %226 = vmatpush.msra.mxu1 %v225_v34  ;;  %v41_v34 = vld [vmem:[%s3633_s3 + $0x98] sm:$0xff]  ;;  %v2697_v36 = vsub.f32 %v44_v49, %v2669_v62  ;;  %v88_v7 = vld.sshfl [vmem:[#allocation1] sm:$0xff pattern:$0x73625140]  ;;  %v3656_v37 = vand.u32 4294901760, %v2682_v55  ;;  %v2710_v49 = vsub.f32 %v43_v13, %v2684_v16  ;;  %v512_v13 = vand.u32 4294901760, %v511_v6 }
  0x29   :  { %440 = vmatpush.msrb.mxu2 %v2522_v32  ;;  %495 = vmatpush.msrb.mxu3 %v494_v61  ;;  %v2728_v21 = vand.u32 4294901760, %v88_v7  ;;  %v2741_v6 = vand.u32 4294901760, %v40_v15 }
  0x2a   :  { %346 = vmatpush.msrb.mxu0 %v3688_v59  ;;  %232 = vmatpush.msra.mxu1 %v231_v47  ;;  %v3691_v59 = vand.u32 4294901760, %v2643_v33  ;;  %v3657_v61 = vand.u32 4294901760, %v2697_v36 }
  0x2b   :  { %442 = vmatpush.msrb.mxu2 %v2551_v56  ;;  %v2712_v56 = vand.u32 4294901760, %v41_v34  ;;  %501 = vmatpush.msrb.mxu3 %v500_v48  ;;  %v540_v48 = vand.u32 4294901760, %v2710_v49 }
  0x2c   :  { %350 = vmatpush.msrb.mxu0 %v3690_v1  ;;  %401 = vmatpush.msrb.mxu1 %v2334_v3  ;;  %v517_v47 = vsub.f32 %v2643_v33, %v3691_v59  ;;  %v3693_v3 = vand.u32 4294901760, %v2659_v39  ;;  %v2726_v59 = vsub.f32 %v42_v38, %v2699_v19  ;;  %v529_v38 = vsub.f32 %v2682_v55, %v3656_v37 }
  0x2d   :  { %444 = vmatpush.msrb.mxu2 %v2569_v18  ;;  %507 = vmatpush.msrb.mxu3 %v506_v14  ;;  %v535_v14 = vsub.f32 %v2697_v36, %v3657_v61  ;;  %v2755_v37 = vsub.f32 %v88_v7, %v2728_v21  ;;  %v541_v7 = vsub.f32 %v2710_v49, %v540_v48  ;;  %v3697_v61 = vand.u32 4294901760, %v2457_v52 }
  0x2e   :  { %354 = vmatpush.msrb.mxu0 %v3692_v20  ;;  %403 = vmatpush.msrb.mxu1 %v2336_v4  ;;  %v523_v1 = vsub.f32 %v2659_v39, %v3693_v3  ;;  %v3694_v4 = vand.u32 4294901760, %v2401_v29  ;;  %v518_v20 = vand.u32 4294901760, %v517_v47  ;;  %v39_v3 = vld [vmem:[%s3633_s3 + $0x88] sm:$0xff]  ;;  %v2744_v29 = vsub.f32 %v41_v34, %v2712_v56 }
  0x2f   :  { %446 = vmatpush.msrb.mxu2 %v2585_v43  ;;  %513 = vmatpush.msrb.mxu3 %v512_v13  ;;  %v2757_v34 = vand.u32 4294901760, %v39_v3  ;;  %v3698_v52 = vand.u32 4294901760, %v2462_v53 }
  0x30   :  { %358 = vmatpush.msrb.mxu0 %v3694_v4  ;;  %405 = vmatpush.msrb.mxu1 %v2338_v5  ;;  %v3695_v5 = vand.u32 4294901760, %v2428_v40  ;;  %v524_v47 = vand.u32 4294901760, %v523_v1  ;;  %v546_v4 = vand.u32 4294901760, %v2726_v59  ;;  %v38_v40 = vld [vmem:[%s3633_s3 + $0x80] sm:$0xff]  ;;  %v530_v1 = vand.u32 4294901760, %v529_v38 }
  0x31   :  { %448 = vmatpush.msrb.mxu2 %v2601_v45  ;;  %519 = vmatpush.msrb.mxu3 %v518_v20  ;;  %v552_v13 = vand.u32 4294901760, %v2744_v29  ;;  %v130_v38 = vand.u32 4294901760, %v2755_v37 }
  0x32   :  { %362 = vmatpush.msrb.mxu0 %v3695_v5  ;;  %407 = vmatpush.msrb.mxu1 %v2349_v9  ;;  %v3696_v9 = vand.u32 4294901760, %v2442_v46  ;;  %v2771_v5 = vsub.f32 %v40_v15, %v2741_v6  ;;  %v2776_v46 = vand.u32 4294901760, %v38_v40  ;;  %v547_v20 = vsub.f32 %v2726_v59, %v546_v4 }
  0x33   :  { %450 = vmatpush.msrb.mxu2 %v2611_v63  ;;  %525 = vmatpush.msrb.mxu3 %v524_v47  ;;  %v2784_v15 = vsub.f32 %v39_v3, %v2757_v34  ;;  %v553_v47 = vsub.f32 %v2744_v29, %v552_v13  ;;  %v131_v3 = vsub.f32 %v2755_v37, %v130_v38 }
  0x34   :  { %366 = vmatpush.msrb.mxu0 %v3696_v9  ;;  %409 = vmatpush.msrb.mxu1 %v2351_v10  ;;  %v536_v10 = vand.u32 4294901760, %v535_v14  ;;  %v558_v14 = vand.u32 4294901760, %v2771_v5  ;;  %v3699_v9 = vand.u32 4294901760, %v2496_v2  ;;  %v2798_v53 = vsub.f32 %v38_v40, %v2776_v46 }
  0x35   :  { %452 = vmatpush.msrb.mxu2 %v2626_v24  ;;  %531 = vmatpush.msrb.mxu3 %v530_v1  ;;  %v564_v1 = vand.u32 4294901760, %v2784_v15  ;;  %v3701_v40 = vand.u32 4294901760, %v2533_v42  ;;  %v3703_v42 = vand.u32 4294901760, %v2556_v57 }
  0x36   :  { %370 = vmatpush.msrb.mxu0 %v3697_v61  ;;  %411 = vmatpush.msrb.mxu1 %v2353_v11  ;;  %v89_v11 = vld.sshfl [vmem:[#allocation1 + $0x8] sm:$0xff pattern:$0x73625140]  ;;  %v542_v61 = vand.u32 4294901760, %v541_v7  ;;  %v559_v2 = vsub.f32 %v2771_v5, %v558_v14 }
  0x37   :  { %454 = vmatpush.msrb.mxu2 %v2653_v22  ;;  %537 = vmatpush.msrb.mxu3 %v536_v10  ;;  %v2803_v7 = vand.u32 4294901760, %v89_v11  ;;  %v570_v10 = vand.u32 4294901760, %v2798_v53 }
  0x38   :  { %374 = vmatpush.msrb.mxu0 %v3698_v52  ;;  %413 = vmatpush.msrb.mxu1 %v2372_v17  ;;  %v548_v17 = vand.u32 4294901760, %v547_v20  ;;  %v3700_v52 = vand.u32 4294901760, %v2516_v30  ;;  %v132_v30 = vand.u32 4294901760, %v131_v3 }
  0x39   :  { %456 = vmatpush.msrb.mxu2 %v2669_v62  ;;  %543 = vmatpush.msrb.mxu3 %v542_v61  ;;  %v2821_v20 = vsub.f32 %v89_v11, %v2803_v7  ;;  %v3702_v61 = vand.u32 4294901760, %v2549_v54 }
  0x3a   :  { %378 = vmatpush.msrb.mxu0 %v3699_v9  ;;  %415 = vmatpush.msrb.mxu1 %v2391_v25  ;;  %v554_v25 = vand.u32 4294901760, %v553_v47  ;;  %v571_v47 = vsub.f32 %v2798_v53, %v570_v10 }
  0x3b   :  { %458 = vmatpush.msrb.mxu2 %v2684_v16  ;;  %549 = vmatpush.msrb.mxu3 %v548_v17  ;;  %v471_v11 = vand.u32 4294901760, %v2821_v20  ;;  %v60_v17 = vld [vmem:[%s3633_s3 + $0x130] sm:$0xff] }
  0x3c   :  { %382 = vmatpush.msrb.mxu0 %v3700_v52  ;;  %417 = vmatpush.msrb.mxu1 %v2398_v28  ;;  %v565_v28 = vsub.f32 %v2784_v15, %v564_v1 }
  0x3d   :  { %460 = vmatpush.msrb.mxu2 %v2699_v19  ;;  %555 = vmatpush.msrb.mxu3 %v554_v25 }
  0x3e   :  { %386 = vmatpush.msrb.mxu0 %v3701_v40  ;;  %419 = vmatpush.msrb.mxu1 %v2419_v35  ;;  %v560_v35 = vand.u32 4294901760, %v559_v2  ;;  %v566_v54 = vand.u32 4294901760, %v565_v28  ;;  %v58_v28 = vld [vmem:[%s3633_s3 + $0x120] sm:$0xff] }
  0x3f   :  { %462 = vmatpush.msrb.mxu2 %v2712_v56  ;;  %133 = vmatmul.f32.vlgmr.msra.gmra.mxu0 %v132_v30 }
  0x40   :  { %390 = vmatpush.msrb.mxu0 %v3702_v61  ;;  %421 = vmatpush.msrb.mxu1 %v2431_v41  ;;  %v572_v41 = vand.u32 4294901760, %v571_v47  ;;  %v90_v47 = vld.sshfl [vmem:[#allocation1 + $0x10] sm:$0xff pattern:$0x73625140] }
  0x41   :  { %464 = vmatpush.msrb.mxu2 %v2741_v6  ;;  %561 = vmatpush.msrb.mxu3 %v560_v35 }
  0x42   :  { %394 = vmatpush.msrb.mxu0 %v3703_v42  ;;  %423 = vmatpush.msrb.mxu1 %v2453_v50  ;;  %v472_v50 = vsub.f32 %v2821_v20, %v471_v11 }
  0x43   :  { %466 = vmatpush.msrb.mxu2 %v2757_v34  ;;  %567 = vmatpush.msrb.mxu3 %v566_v54 }
  0x44   :  { %581 = vmatpush.msra.mxu0 %v2541_v44  ;;  %425 = vmatpush.msrb.mxu1 %v2476_v58  ;;  %v3704_v58 = vand.u32 4294901760, %v2541_v44  ;;  %v473_v57 = vand.u32 4294901760, %v472_v50  ;;  %v3706_v44 = vand.u32 4294901760, %v2583_v8  ;;  %v3059_v50 = vand.u32 4294901760, %v58_v28 }
  0x45   :  { %288 = vmatmul.f32.vlgmr.msra.gmra.mxu2 %v2755_v37  ;;  %327 = vmatmul.f32.vlgmr.msra.gmra.mxu3 %v130_v38  ;;  %v61_v38 = vld [vmem:[%s3633_s3 + $0x138] sm:$0xff] }
  0x46   :  { %584 = vmatpush.msra.mxu0 %v2559_v60  ;;  %427 = vmatpush.msrb.mxu1 %v2492_v0  ;;  %v3705_v0 = vand.u32 4294901760, %v2559_v60  ;;  %v3708_v60 = vld [vmem:[#allocation6_spill] sm:$0xff]  ;;  %v3013_v52 = vand.u32 4294901760, %v61_v38 }
  0x47   :  { %468 = vmatpush.msrb.mxu2 %v2776_v46  ;;  %573 = vmatpush.msrb.mxu3 %v572_v41 }
  0x48   :  { %587 = vmatpush.msra.mxu0 %v2583_v8  ;;  %429 = vmatpush.msrb.mxu1 %v2513_v26  ;;  %v3707_v26 = vand.u32 4294901760, %v2599_v51  ;;  %v3709_v8 = vand.u32 4294901760, %v2619_v27 }
  0x49   :  { %675 = vmatpush.msra.mxu2 %v3704_v58  ;;  %234 = vmatmul.f32.vlgmr.msra.gmra.mxu1 %v2728_v21 }
  0x4a   :  { %590 = vmatpush.msra.mxu0 %v2599_v51  ;;  %742 = vmatpush.msra.mxu3 %v2507_v12  ;;  %v3710_v51 = vand.u32 4294901760, %v2637_v23 }
  0x4b   :  { %679 = vmatpush.msra.mxu2 %v3705_v0  ;;  %431 = vmatpush.msrb.mxu1 %v2520_v31  ;;  %v3714_v31 = vand.u32 4294901760, %v2697_v36 }
  0x4c   :  { %593 = vmatpush.msra.mxu0 %v2619_v27  ;;  %744 = vmatpush.msra.mxu3 %v2522_v32  ;;  %v3711_v27 = vand.u32 4294901760, %v2643_v33 }
  0x4d   :  { %634 = vmatpush.msra.mxu1 %v2507_v12  ;;  %683 = vmatpush.msra.mxu2 %v3706_v44  ;;  %v3712_v12 = vand.u32 4294901760, %v2659_v39  ;;  %v56_v44 = vld [vmem:[%s3633_s3 + $0x110] sm:$0xff] }
  0x4e   :  { %474 = vmatmul.f32.vlgmr.msrb.gmra.mxu2 %v473_v57  ;;  %596 = vmatpush.msra.mxu0 %v2637_v23  ;;  %v69_v23 = vld [vmem:[%s3633_s3 + $0x178] sm:$0xff] }
  0x4f   :  { %636 = vmatpush.msra.mxu1 %v2522_v32  ;;  %687 = vmatpush.msra.mxu2 %v3707_v26  ;;  %v2903_v32 = vand.u32 4294901760, %v69_v23  ;;  %v3070_v26 = vand.u32 4294901760, %v90_v47 }
  0x50   :  { %746 = vmatpush.msra.mxu3 %v3708_v60  ;;  %396 = vmatmul.f32.vlgmr.msrb.gmra.mxu0 %v2728_v21 }
  0x51   :  { %575 = vmatmul.f32.vlgmr.msrb.gmra.mxu3 %v2803_v7  ;;  %599 = vmatpush.msra.mxu0 %v2643_v33  ;;  %v3713_v33 = vand.u32 4294901760, %v2682_v55 }
  0x52   :  { %638 = vmatpush.msra.mxu1 %v3708_v60  ;;  %691 = vmatpush.msra.mxu2 %v3709_v8 }
  0x53   :  { %748 = vmatpush.msra.mxu3 %v2569_v18  ;;  %433 = vmatmul.f32.vlgmr.msrb.gmra.mxu1 %v2728_v21 }
  0x54   :  { %602 = vmatpush.msra.mxu0 %v2659_v39  ;;  %640 = vmatpush.msra.mxu1 %v2569_v18  ;;  %v66_v39 = vld [vmem:[%s3633_s3 + $0x160] sm:$0xff] }
  0x55   :  { %695 = vmatpush.msra.mxu2 %v3710_v51  ;;  %750 = vmatpush.msra.mxu3 %v2585_v43 }
  0x56   :  { %605 = vmatpush.msra.mxu0 %v2682_v55  ;;  %642 = vmatpush.msra.mxu1 %v2585_v43  ;;  %v67_v55 = vld [vmem:[%s3633_s3 + $0x168] sm:$0xff]  ;;  %v2926_v43 = vsub.f32 %v69_v23, %v2903_v32 }
  0x57   :  { %699 = vmatpush.msra.mxu2 %v3711_v27  ;;  %752 = vmatpush.msra.mxu3 %v2601_v45  ;;  %v2923_v18 = vand.u32 4294901760, %v67_v55 }
  0x58   :  { %608 = vmatpush.msra.mxu0 %v2697_v36  ;;  %644 = vmatpush.msra.mxu1 %v2601_v45  ;;  %v68_v45 = vld [vmem:[%s3633_s3 + $0x170] sm:$0xff] }
  0x59   :  { %703 = vmatpush.msra.mxu2 %v3712_v12  ;;  %754 = vmatpush.msra.mxu3 %v2611_v63  ;;  %v64_v36 = vld [vmem:[%s3633_s3 + $0x150] sm:$0xff] }
  0x5a   :  { %611 = vmatpush.msra.mxu0 %v2710_v49  ;;  %646 = vmatpush.msra.mxu1 %v2611_v63  ;;  %v65_v63 = vld [vmem:[%s3633_s3 + $0x158] sm:$0xff]  ;;  %v2953_v49 = vsub.f32 %v67_v55, %v2923_v18  ;;  %v55_v55 = vld [vmem:[%s3633_s3 + $0x108] sm:$0xff] }
  0x5b   :  { %707 = vmatpush.msra.mxu2 %v3713_v33  ;;  %756 = vmatpush.msra.mxu3 %v2626_v24  ;;  %v2946_v37 = vand.u32 4294901760, %v65_v63  ;;  %v3088_v33 = vand.u32 4294901760, %v56_v44 }
  0x5c   :  { %614 = vmatpush.msra.mxu0 %v2726_v59  ;;  %648 = vmatpush.msra.mxu1 %v2626_v24  ;;  %v2913_v24 = vand.u32 4294901760, %v68_v45  ;;  %v2957_v59 = vand.u32 4294901760, %v64_v36 }
  0x5d   :  { %711 = vmatpush.msra.mxu2 %v3714_v31  ;;  %758 = vmatpush.msra.mxu3 %v2653_v22  ;;  %v3092_v31 = vsub.f32 %v58_v28, %v3059_v50 }
  0x5e   :  { %617 = vmatpush.msra.mxu0 %v2744_v29  ;;  %650 = vmatpush.msra.mxu1 %v2653_v22  ;;  %v2936_v22 = vand.u32 4294901760, %v66_v39  ;;  %v62_v29 = vld [vmem:[%s3633_s3 + $0x140] sm:$0xff] }
  0x5f   :  { %715 = vmatpush.msra.mxu2 %v540_v48  ;;  %760 = vmatpush.msra.mxu3 %v2669_v62 }
  0x60   :  { %620 = vmatpush.msra.mxu0 %v2771_v5  ;;  %652 = vmatpush.msra.mxu1 %v2669_v62  ;;  %v2939_v62 = vsub.f32 %v68_v45, %v2913_v24  ;;  %v2967_v48 = vsub.f32 %v66_v39, %v2936_v22  ;;  %v2989_v5 = vsub.f32 %v64_v36, %v2957_v59 }
  0x61   :  { %719 = vmatpush.msra.mxu2 %v546_v4  ;;  %762 = vmatpush.msra.mxu3 %v2684_v16  ;;  %v3100_v39 = vsub.f32 %v90_v47, %v3070_v26 }
  0x62   :  { %623 = vmatpush.msra.mxu0 %v2784_v15  ;;  %654 = vmatpush.msra.mxu1 %v2684_v16  ;;  %v821_v16 = vand.u32 4294901760, %v2926_v43  ;;  %v827_v21 = vand.u32 4294901760, %v2939_v62  ;;  %v3671_v9 = vand.u32 4294901760, %v2967_v48  ;;  %v3666_v25 = vand.u32 4294901760, %v2989_v5 }
  0x63   :  { %723 = vmatpush.msra.mxu2 %v552_v13  ;;  %764 = vmatpush.msra.mxu3 %v2699_v19 }
  0x64   :  { %626 = vmatpush.msra.mxu0 %v2798_v53  ;;  %656 = vmatpush.msra.mxu1 %v2699_v19  ;;  %v63_v19 = vld [vmem:[%s3633_s3 + $0x148] sm:$0xff]  ;;  %v822_v4 = vsub.f32 %v2926_v43, %v821_v16  ;;  %v828_v15 = vsub.f32 %v2939_v62, %v827_v21  ;;  %v840_v40 = vsub.f32 %v2967_v48, %v3671_v9 }
  0x65   :  { %727 = vmatpush.msra.mxu2 %v558_v14  ;;  %766 = vmatpush.msra.mxu3 %v2712_v56  ;;  %v2983_v13 = vand.u32 4294901760, %v63_v19  ;;  %v2999_v14 = vand.u32 4294901760, %v62_v29  ;;  %v852_v54 = vsub.f32 %v2989_v5, %v3666_v25 }
  0x66   :  { %629 = vmatmul.f32.vlgmr.msra.gmra.mxu0 %v2821_v20  ;;  %658 = vmatpush.msra.mxu1 %v2712_v56  ;;  %v2972_v56 = vsub.f32 %v65_v63, %v2946_v37  ;;  %v823_v3 = vand.u32 4294901760, %v822_v4  ;;  %v829_v2 = vand.u32 4294901760, %v828_v15  ;;  %v3048_v20 = vsub.f32 %v61_v38, %v3013_v52  ;;  %v85_v4 = vld [vmem:[%s3633_s3 + $0x1f8] sm:$0xff]  ;;  %v54_v15 = vld [vmem:[%s3633_s3 + $0x100] sm:$0xff] }
  0x67   :  { %779 = vmatpush.msrb.mxu0 %v2903_v32  ;;  %731 = vmatpush.msra.mxu2 %v564_v1  ;;  %v3032_v30 = vsub.f32 %v62_v29, %v2999_v14  ;;  %v841_v41 = vand.u32 4294901760, %v840_v40  ;;  %v853_v12 = vand.u32 4294901760, %v852_v54  ;;  %v3115_v38 = vand.u32 4294901760, %v55_v55 }
  0x68   :  { %768 = vmatpush.msra.mxu3 %v2741_v6  ;;  %660 = vmatpush.msra.mxu1 %v2741_v6  ;;  %v833_v6 = vand.u32 4294901760, %v2953_v49  ;;  %v3668_v53 = vand.u32 4294901760, %v2972_v56  ;;  %v3662_v51 = vand.u32 4294901760, %v3048_v20  ;;  %v3131_v40 = vand.u32 4294901760, %v85_v4 }
  0x69   :  { %781 = vmatpush.msrb.mxu0 %v2913_v24  ;;  %735 = vmatpush.msra.mxu2 %v570_v10  ;;  %v3029_v10 = vand.u32 4294901760, %v60_v17  ;;  %v3663_v58 = vand.u32 4294901760, %v3032_v30  ;;  %v3140_v47 = vand.u32 4294901760, %v54_v15 }
  0x6a   :  { %770 = vmatpush.msra.mxu3 %v2757_v34  ;;  %737 = vmatmul.f32.vlgmr.msra.gmra.mxu2 %v2803_v7  ;;  %v834_v1 = vsub.f32 %v2953_v49, %v833_v6  ;;  %v870_v36 = vsub.f32 %v3048_v20, %v3662_v51 }
  0x6b   :  { %783 = vmatpush.msrb.mxu0 %v2923_v18  ;;  %922 = vmatpush.msrb.mxu2 %v2926_v43  ;;  %v3063_v0 = vsub.f32 %v60_v17, %v3029_v10  ;;  %v864_v23 = vsub.f32 %v3032_v30, %v3663_v58  ;;  %v77_v43 = vld [vmem:[%s3633_s3 + $0x1b8] sm:$0xff] }
  0x6c   :  { %662 = vmatpush.msra.mxu1 %v2757_v34  ;;  %772 = vmatpush.msra.mxu3 %v2776_v46  ;;  %v3016_v34 = vsub.f32 %v63_v19, %v2983_v13  ;;  %v835_v61 = vand.u32 4294901760, %v834_v1  ;;  %v3658_v1 = vand.u32 4294901760, %v3092_v31  ;;  %v871_v28 = vand.u32 4294901760, %v870_v36 }
  0x6d   :  { %774 = vmatmul.f32.vlgmr.msra.gmra.mxu3 %v2803_v7  ;;  %785 = vmatpush.msrb.mxu0 %v2936_v22  ;;  %v59_v7 = vld [vmem:[%s3633_s3 + $0x128] sm:$0xff]  ;;  %v3661_v45 = vand.u32 4294901760, %v3063_v0  ;;  %v865_v17 = vand.u32 4294901760, %v864_v23  ;;  %v82_v23 = vld [vmem:[%s3633_s3 + $0x1e0] sm:$0xff] }
  0x6e   :  { %925 = vmatpush.msrb.mxu2 %v2939_v62  ;;  %975 = vmatpush.msrb.mxu3 %v2903_v32  ;;  %v3044_v35 = vand.u32 4294901760, %v59_v7  ;;  %v3665_v42 = vand.u32 4294901760, %v3016_v34  ;;  %v76_v62 = vld [vmem:[%s3633_s3 + $0x1b0] sm:$0xff] }
  0x6f   :  { %664 = vmatpush.msra.mxu1 %v2776_v46  ;;  %787 = vmatpush.msrb.mxu0 %v2946_v37  ;;  %v846_v46 = vsub.f32 %v2972_v56, %v3668_v53 }
  0x70   :  { %668 = vmatmul.f32.vlgmr.msra.gmra.mxu1 %v471_v11  ;;  %928 = vmatpush.msrb.mxu2 %v2953_v49  ;;  %v57_v11 = vld [vmem:[%s3633_s3 + $0x118] sm:$0xff]  ;;  %v858_v60 = vsub.f32 %v3016_v34, %v3665_v42  ;;  %v3080_v27 = vsub.f32 %v59_v7, %v3044_v35  ;;  %v3126_v7 = vsub.f32 %v56_v44, %v3088_v33 }
  0x71   :  { %824 = vmatpush.msrb.mxu1 %v823_v3  ;;  %977 = vmatpush.msrb.mxu3 %v2913_v24  ;;  %v847_v57 = vand.u32 4294901760, %v846_v46  ;;  %v3076_v8 = vand.u32 4294901760, %v57_v11  ;;  %v876_v3 = vsub.f32 %v3063_v0, %v3661_v45  ;;  %v84_v46 = vld [vmem:[%s3633_s3 + $0x1f0] sm:$0xff]  ;;  %v888_v44 = vsub.f32 %v3092_v31, %v3658_v1 }
  0x72   :  { %789 = vmatpush.msrb.mxu0 %v2957_v59  ;;  %931 = vmatpush.msrb.mxu2 %v2967_v48  ;;  %v859_v63 = vand.u32 4294901760, %v858_v60  ;;  %v3659_v19 = vand.u32 4294901760, %v3080_v27  ;;  %v3664_v60 = vand.u32 4294901760, %v3126_v7 }
  0x73   :  { %830 = vmatpush.msrb.mxu1 %v829_v2  ;;  %979 = vmatpush.msrb.mxu3 %v2923_v18  ;;  %v3108_v29 = vsub.f32 %v57_v11, %v3076_v8  ;;  %v812_v2 = vand.u32 4294901760, %v3100_v39  ;;  %v3146_v11 = vsub.f32 %v55_v55, %v3115_v38 }
  0x74   :  { %791 = vmatpush.msrb.mxu0 %v2983_v13  ;;  %934 = vmatpush.msrb.mxu2 %v2972_v56 }
  0x75   :  { %836 = vmatpush.msrb.mxu1 %v835_v61  ;;  %981 = vmatpush.msrb.mxu3 %v2936_v22  ;;  %v882_v61 = vsub.f32 %v3080_v27, %v3659_v19  ;;  %v3660_v54 = vand.u32 4294901760, %v3108_v29  ;;  %v813_v55 = vsub.f32 %v3100_v39, %v812_v2  ;;  %v81_v19 = vld [vmem:[%s3633_s3 + $0x1d8] sm:$0xff] }
  0x76   :  { %793 = vmatpush.msrb.mxu0 %v2999_v14  ;;  %937 = vmatpush.msrb.mxu2 %v2989_v5  ;;  %v3196_v58 = vand.u32 4294901760, %v81_v19 }
  0x77   :  { %842 = vmatpush.msrb.mxu1 %v841_v41  ;;  %983 = vmatpush.msrb.mxu3 %v2946_v37  ;;  %v83_v41 = vld [vmem:[%s3633_s3 + $0x1e8] sm:$0xff]  ;;  %v883_v36 = vand.u32 4294901760, %v882_v61  ;;  %v889_v61 = vand.u32 4294901760, %v888_v44  ;;  %v814_v45 = vand.u32 4294901760, %v813_v55 }
  0x78   :  { %795 = vmatpush.msrb.mxu0 %v3013_v52  ;;  %940 = vmatpush.msrb.mxu2 %v3016_v34  ;;  %v3176_v1 = vand.u32 4294901760, %v83_v41 }
  0x79   :  { %848 = vmatpush.msrb.mxu1 %v847_v57  ;;  %985 = vmatpush.msrb.mxu3 %v2957_v59  ;;  %v877_v57 = vand.u32 4294901760, %v876_v3  ;;  %v3174_v3 = vsub.f32 %v54_v15, %v3140_v47  ;;  %v900_v15 = vsub.f32 %v3126_v7, %v3664_v60 }
  0x7a   :  { %797 = vmatpush.msrb.mxu0 %v3029_v10  ;;  %943 = vmatpush.msrb.mxu2 %v3032_v30  ;;  %v3204_v60 = vsub.f32 %v83_v41, %v3176_v1 }
  0x7b   :  { %854 = vmatpush.msrb.mxu1 %v853_v12  ;;  %987 = vmatpush.msrb.mxu3 %v2983_v13  ;;  %v3156_v12 = vand.u32 4294901760, %v84_v46  ;;  %v901_v41 = vand.u32 4294901760, %v900_v15 }
  0x7c   :  { %799 = vmatpush.msrb.mxu0 %v3044_v35  ;;  %946 = vmatpush.msrb.mxu2 %v3048_v20  ;;  %v3672_v15 = vand.u32 4294901760, %v3204_v60 }
  0x7d   :  { %860 = vmatpush.msrb.mxu1 %v859_v63  ;;  %989 = vmatpush.msrb.mxu3 %v2999_v14  ;;  %v3167_v63 = vsub.f32 %v85_v4, %v3131_v40  ;;  %v3667_v4 = vand.u32 4294901760, %v3146_v11 }
  0x7e   :  { %801 = vmatpush.msrb.mxu0 %v3059_v50  ;;  %949 = vmatpush.msrb.mxu2 %v3063_v0 }
  0x7f   :  { %866 = vmatpush.msrb.mxu1 %v865_v17  ;;  %991 = vmatpush.msrb.mxu3 %v3013_v52  ;;  %v894_v17 = vsub.f32 %v3108_v29, %v3660_v54  ;;  %v3191_v54 = vsub.f32 %v84_v46, %v3156_v12  ;;  %v3669_v51 = vand.u32 4294901760, %v3167_v63  ;;  %v3670_v46 = vand.u32 4294901760, %v3174_v3 }
  0x80   :  { %803 = vmatpush.msrb.mxu0 %v3076_v8  ;;  %952 = vmatpush.msrb.mxu2 %v3080_v27  ;;  %v906_v55 = vsub.f32 %v3146_v11, %v3667_v4  ;;  %v3226_v4 = vsub.f32 %v81_v19, %v3196_v58 }
  0x81   :  { %872 = vmatpush.msrb.mxu1 %v871_v28  ;;  %993 = vmatpush.msrb.mxu3 %v3029_v10  ;;  %v3184_v28 = vand.u32 4294901760, %v82_v23  ;;  %v895_v44 = vand.u32 4294901760, %v894_v17  ;;  %v3673_v17 = vand.u32 4294901760, %v3191_v54 }
  0x82   :  { %805 = vmatpush.msrb.mxu0 %v3088_v33  ;;  %955 = vmatpush.msrb.mxu2 %v3092_v31  ;;  %v907_v19 = vand.u32 4294901760, %v906_v55  ;;  %v3675_v9 = vand.u32 4294901760, %v3226_v4 }
  0x83   :  { %878 = vmatpush.msrb.mxu1 %v877_v57  ;;  %995 = vmatpush.msrb.mxu3 %v3044_v35  ;;  %v80_v57 = vld [vmem:[%s3633_s3 + $0x1d0] sm:$0xff]  ;;  %v3212_v42 = vsub.f32 %v82_v23, %v3184_v28  ;;  %v1163_v23 = vsub.f32 %v3167_v63, %v3669_v51 }
  0x84   :  { %807 = vmatpush.msrb.mxu0 %v3115_v38  ;;  %958 = vmatpush.msrb.mxu2 %v3108_v29  ;;  %v3219_v25 = vand.u32 4294901760, %v80_v57 }
  0x85   :  { %884 = vmatpush.msrb.mxu1 %v883_v36  ;;  %997 = vmatpush.msrb.mxu3 %v3059_v50  ;;  %v79_v36 = vld [vmem:[%s3633_s3 + $0x1c8] sm:$0xff]  ;;  %v3674_v51 = vand.u32 4294901760, %v3212_v42  ;;  %v1164_v55 = vand.u32 4294901760, %v1163_v23  ;;  %v3270_v23 = vand.u32 4294901760, %v77_v43 }
  0x86   :  { %809 = vmatpush.msrb.mxu0 %v3140_v47  ;;  %961 = vmatpush.msrb.mxu2 %v3126_v7  ;;  %v3237_v53 = vand.u32 4294901760, %v79_v36 }
  0x87   :  { %890 = vmatpush.msrb.mxu1 %v889_v61  ;;  %999 = vmatpush.msrb.mxu3 %v3076_v8  ;;  %v78_v61 = vld [vmem:[%s3633_s3 + $0x1c0] sm:$0xff]  ;;  %v1181_v49 = vsub.f32 %v3212_v42, %v3674_v51  ;;  %v1187_v51 = vsub.f32 %v3226_v4, %v3675_v9 }
  0x88   :  { %815 = vmatmul.f32.vlgmr.msrb.gmra.mxu0 %v814_v45  ;;  %964 = vmatpush.msrb.mxu2 %v3146_v11  ;;  %v912_v45 = vsub.f32 %v3174_v3, %v3670_v46  ;;  %v3253_v46 = vand.u32 4294901760, %v78_v61 }
  0x89   :  { %1016 = vmatpush.msra.mxu0 %v821_v16  ;;  %896 = vmatpush.msrb.mxu1 %v895_v44  ;;  %v1169_v16 = vsub.f32 %v3191_v54, %v3673_v17  ;;  %v3251_v44 = vsub.f32 %v80_v57, %v3219_v25  ;;  %v1175_v57 = vsub.f32 %v3204_v60, %v3672_v15  ;;  %v3287_v17 = vand.u32 4294901760, %v76_v62 }
  0x8a   :  { %1001 = vmatpush.msrb.mxu3 %v3088_v33  ;;  %967 = vmatpush.msrb.mxu2 %v3174_v3  ;;  %v1188_v9 = vand.u32 4294901760, %v1187_v51  ;;  %v3718_v51 = vand.u32 4294901760, %v3016_v34  ;;  %v71_v34 = vld [vmem:[%s3633_s3 + $0x188] sm:$0xff] }
  0x8b   :  { %1020 = vmatpush.msra.mxu0 %v827_v21  ;;  %902 = vmatpush.msrb.mxu1 %v901_v41  ;;  %v913_v21 = vand.u32 4294901760, %v912_v45  ;;  %v3268_v41 = vsub.f32 %v79_v36, %v3237_v53  ;;  %v3715_v45 = vand.u32 4294901760, %v2967_v48  ;;  %v1170_v36 = vand.u32 4294901760, %v1169_v16  ;;  %v74_v48 = vld [vmem:[%s3633_s3 + $0x1a0] sm:$0xff] }
  0x8c   :  { %1003 = vmatpush.msrb.mxu3 %v3115_v38  ;;  %970 = vmatmul.f32.vlgmr.msrb.gmra.mxu2 %v3100_v39  ;;  %v3676_v15 = vand.u32 4294901760, %v3251_v44  ;;  %v3716_v39 = vand.u32 4294901760, %v2972_v56  ;;  %v3300_v16 = vsub.f32 %v77_v43, %v3270_v23 }
  0x8d   :  { %1024 = vmatpush.msra.mxu0 %v833_v6  ;;  %1120 = vmatpush.msra.mxu2 %v3131_v40  ;;  %v75_v6 = vld [vmem:[%s3633_s3 + $0x1a8] sm:$0xff] }
  0x8e   :  { %908 = vmatpush.msrb.mxu1 %v907_v19  ;;  %1005 = vmatpush.msrb.mxu3 %v3140_v47  ;;  %v3285_v19 = vsub.f32 %v78_v61, %v3253_v46  ;;  %v3677_v61 = vand.u32 4294901760, %v3268_v41  ;;  %v1193_v56 = vsub.f32 %v3251_v44, %v3676_v15 }
  0x8f   :  { %1009 = vmatmul.f32.vlgmr.msrb.gmra.mxu3 %v812_v2  ;;  %1028 = vmatpush.msra.mxu0 %v3715_v45  ;;  %v1176_v2 = vand.u32 4294901760, %v1175_v57  ;;  %v3302_v45 = vand.u32 4294901760, %v75_v6  ;;  %v3315_v57 = vsub.f32 %v76_v62, %v3287_v17 }
  0x90   :  { %1122 = vmatpush.msra.mxu2 %v3156_v12  ;;  %1165 = vmatpush.msra.mxu3 %v1164_v55  ;;  %v1182_v55 = vand.u32 4294901760, %v1181_v49  ;;  %v3678_v43 = vand.u32 4294901760, %v3285_v19  ;;  %v3717_v49 = vand.u32 4294901760, %v2989_v5  ;;  %v72_v5 = vld [vmem:[%s3633_s3 + $0x190] sm:$0xff] }
  0x91   :  { %914 = vmatpush.msrb.mxu1 %v913_v21  ;;  %1032 = vmatpush.msra.mxu0 %v3716_v39  ;;  %v73_v21 = vld [vmem:[%s3633_s3 + $0x198] sm:$0xff]  ;;  %v3317_v39 = vand.u32 4294901760, %v74_v48  ;;  %v3328_v62 = vsub.f32 %v75_v6, %v3302_v45 }
  0x92   :  { %916 = vmatmul.f32.vlgmr.msrb.gmra.mxu1 %v3070_v26  ;;  %1124 = vmatpush.msra.mxu2 %v3176_v1  ;;  %v3330_v15 = vand.u32 4294901760, %v73_v21  ;;  %v1205_v6 = vsub.f32 %v3285_v19, %v3678_v43 }
  0x93   :  { %1083 = vmatpush.msra.mxu1 %v2903_v32  ;;  %1171 = vmatpush.msra.mxu3 %v1170_v36  ;;  %v1199_v32 = vsub.f32 %v3268_v41, %v3677_v61  ;;  %v3679_v36 = vand.u32 4294901760, %v3300_v16  ;;  %v3719_v61 = vand.u32 4294901760, %v3032_v30  ;;  %v70_v30 = vld [vmem:[%s3633_s3 + $0x180] sm:$0xff] }
  0x94   :  { %1036 = vmatpush.msra.mxu0 %v3717_v49  ;;  %1126 = vmatpush.msra.mxu2 %v3184_v28  ;;  %v3344_v49 = vsub.f32 %v74_v48, %v3317_v39  ;;  %v3360_v43 = vsub.f32 %v73_v21, %v3330_v15 }
  0x95   :  { %1085 = vmatpush.msra.mxu1 %v2913_v24  ;;  %1177 = vmatpush.msra.mxu3 %v1176_v2  ;;  %v1194_v24 = vand.u32 4294901760, %v1193_v56  ;;  %v3680_v2 = vand.u32 4294901760, %v3315_v57  ;;  %v1211_v48 = vsub.f32 %v3300_v16, %v3679_v36  ;;  %v3721_v56 = vand.u32 4294901760, %v3063_v0 }
  0x96   :  { %1040 = vmatpush.msra.mxu0 %v3718_v51  ;;  %1128 = vmatpush.msra.mxu2 %v3196_v58  ;;  %v91_v51 = vld.sshfl [vmem:[#allocation1 + $0x18] sm:$0xff pattern:$0x73625140]  ;;  %v1228_v36 = vand.u32 4294901760, %v3344_v49  ;;  %v3723_v0 = vand.u32 4294901760, %v3080_v27 }
  0x97   :  { %1087 = vmatpush.msra.mxu1 %v2923_v18  ;;  %1183 = vmatpush.msra.mxu3 %v1182_v55  ;;  %v3352_v18 = vand.u32 4294901760, %v72_v5  ;;  %v1200_v55 = vand.u32 4294901760, %v1199_v32  ;;  %v1206_v32 = vand.u32 4294901760, %v1205_v6  ;;  %v1217_v21 = vsub.f32 %v3315_v57, %v3680_v2 }
  0x98   :  { %1044 = vmatpush.msra.mxu0 %v3719_v61  ;;  %1130 = vmatpush.msra.mxu2 %v3219_v25  ;;  %v3720_v61 = vand.u32 4294901760, %v3048_v20  ;;  %v1234_v2 = vand.u32 4294901760, %v3360_v43 }
  0x99   :  { %1089 = vmatpush.msra.mxu1 %v2936_v22  ;;  %1189 = vmatpush.msra.mxu3 %v1188_v9  ;;  %v3368_v22 = vand.u32 4294901760, %v71_v34  ;;  %v3370_v9 = vand.u32 4294901760, %v91_v51  ;;  %v3381_v20 = vsub.f32 %v72_v5, %v3352_v18 }
  0x9a   :  { %1048 = vmatpush.msra.mxu0 %v3720_v61  ;;  %1132 = vmatpush.msra.mxu2 %v3237_v53  ;;  %v3383_v61 = vand.u32 4294901760, %v70_v30 }
  0x9b   :  { %1091 = vmatpush.msra.mxu1 %v2946_v37  ;;  %1195 = vmatpush.msra.mxu3 %v1194_v24  ;;  %v1212_v37 = vand.u32 4294901760, %v1211_v48  ;;  %v3722_v24 = vand.u32 4294901760, %v3328_v62  ;;  %v3394_v5 = vsub.f32 %v71_v34, %v3368_v22  ;;  %v3724_v48 = vand.u32 4294901760, %v3092_v31 }
  0x9c   :  { %1052 = vmatpush.msra.mxu0 %v3721_v56  ;;  %1134 = vmatpush.msra.mxu2 %v3253_v46  ;;  %v3397_v56 = vsub.f32 %v91_v51, %v3370_v9  ;;  %v1240_v27 = vand.u32 4294901760, %v3381_v20  ;;  %v3408_v34 = vsub.f32 %v70_v30, %v3383_v61  ;;  %v1235_v51 = vsub.f32 %v3360_v43, %v1234_v2 }
  0x9d   :  { %1093 = vmatpush.msra.mxu1 %v2957_v59  ;;  %1201 = vmatpush.msra.mxu3 %v1200_v55  ;;  %v1223_v6 = vsub.f32 %v3328_v62, %v3722_v24  ;;  %v1218_v59 = vand.u32 4294901760, %v1217_v21  ;;  %v1229_v55 = vsub.f32 %v3344_v49, %v1228_v36  ;;  %v1246_v31 = vand.u32 4294901760, %v3394_v5 }
  0x9e   :  { %1056 = vmatpush.msra.mxu0 %v3723_v0  ;;  %1136 = vmatpush.msra.mxu2 %v3270_v23  ;;  %v1153_v21 = vand.u32 4294901760, %v3397_v56  ;;  %v1236_v24 = vand.u32 4294901760, %v1235_v51 }
  0x9f   :  { %1095 = vmatpush.msra.mxu1 %v2983_v13  ;;  %1207 = vmatpush.msra.mxu3 %v1206_v32  ;;  %v1224_v13 = vand.u32 4294901760, %v1223_v6  ;;  %v3725_v32 = vand.u32 4294901760, %v3108_v29  ;;  %v1230_v30 = vand.u32 4294901760, %v1229_v55  ;;  %v1241_v29 = vsub.f32 %v3381_v20, %v1240_v27 }
  0xa0   :  { %1060 = vmatpush.msra.mxu0 %v3724_v48  ;;  %1138 = vmatpush.msra.mxu2 %v3287_v17  ;;  %v3727_v6 = vand.u32 4294901760, %v3146_v11 }
  0xa1   :  { %1097 = vmatpush.msra.mxu1 %v2999_v14  ;;  %1213 = vmatpush.msra.mxu3 %v1212_v37  ;;  %v3726_v14 = vand.u32 4294901760, %v3126_v7  ;;  %v1252_v37 = vand.u32 4294901760, %v3408_v34  ;;  %v1154_v7 = vsub.f32 %v3397_v56, %v1153_v21  ;;  %v1242_v11 = vand.u32 4294901760, %v1241_v29 }
  0xa2   :  { %1064 = vmatpush.msra.mxu0 %v3725_v32  ;;  %1140 = vmatpush.msra.mxu2 %v3302_v45 }
  0xa3   :  { %1099 = vmatpush.msra.mxu1 %v3013_v52  ;;  %1219 = vmatpush.msra.mxu3 %v1218_v59  ;;  %v1247_v52 = vsub.f32 %v3394_v5, %v1246_v31  ;;  %v1253_v0 = vsub.f32 %v3408_v34, %v1252_v37 }
  0xa4   :  { %1068 = vmatpush.msra.mxu0 %v3726_v14  ;;  %1142 = vmatpush.msra.mxu2 %v3317_v39 }
  0xa5   :  { %1101 = vmatpush.msra.mxu1 %v3029_v10  ;;  %1225 = vmatpush.msra.mxu3 %v1224_v13  ;;  %v3728_v10 = vand.u32 4294901760, %v3174_v3  ;;  %v1248_v59 = vand.u32 4294901760, %v1247_v52  ;;  %v1254_v3 = vand.u32 4294901760, %v1253_v0 }
  0xa6   :  { %1072 = vmatpush.msra.mxu0 %v3727_v6  ;;  %1144 = vmatpush.msra.mxu2 %v3330_v15 }
  0xa7   :  { %1103 = vmatpush.msra.mxu1 %v3044_v35  ;;  %1231 = vmatpush.msra.mxu3 %v1230_v30  ;;  %v1155_v35 = vand.u32 4294901760, %v1154_v7 }
  0xa8   :  { %1076 = vmatpush.msra.mxu0 %v3728_v10  ;;  %1146 = vmatpush.msra.mxu2 %v3352_v18 }
  0xa9   :  { %1105 = vmatpush.msra.mxu1 %v3059_v50  ;;  %1237 = vmatpush.msra.mxu3 %v1236_v24  ;;  %v3729_v50 = vand.u32 4294901760, %v3167_v63 }
  0xaa   :  { %1078 = vmatmul.f32.vlgmr.msra.gmra.mxu0 %v3070_v26  ;;  %1148 = vmatpush.msra.mxu2 %v3368_v22 }
  0xab   :  { %1263 = vmatpush.msrb.mxu0 %v3167_v63  ;;  %1107 = vmatpush.msra.mxu1 %v3076_v8  ;;  %v3730_v8 = vand.u32 4294901760, %v3191_v54 }
  0xac   :  { %1243 = vmatpush.msra.mxu3 %v1242_v11  ;;  %1150 = vmatpush.msra.mxu2 %v3383_v61 }
  0xad   :  { %1266 = vmatpush.msrb.mxu0 %v3191_v54  ;;  %1109 = vmatpush.msra.mxu1 %v3088_v33  ;;  %v3731_v33 = vand.u32 4294901760, %v3204_v60 }
  0xae   :  { %1249 = vmatpush.msra.mxu3 %v1248_v59  ;;  %1156 = vmatmul.f32.vlgmr.msra.gmra.mxu2 %v1155_v35 }
  0xaf   :  { %1269 = vmatpush.msrb.mxu0 %v3204_v60  ;;  %1357 = vmatpush.msrb.mxu2 %v3729_v50 }
  0xb0   :  { %1111 = vmatpush.msra.mxu1 %v3115_v38  ;;  %1255 = vmatpush.msra.mxu3 %v1254_v3  ;;  %v3732_v38 = vand.u32 4294901760, %v3212_v42 }
  0xb1   :  { %1257 = vmatmul.f32.vlgmr.msra.gmra.mxu3 %v3370_v9  ;;  %1272 = vmatpush.msrb.mxu0 %v3212_v42  ;;  %v3735_v42 = vand.u32 4294901760, %v3268_v41 }
  0xb2   :  { %1361 = vmatpush.msrb.mxu2 %v3730_v8  ;;  %1424 = vmatpush.msrb.mxu3 %v3131_v40 }
  0xb3   :  { %1113 = vmatpush.msra.mxu1 %v3140_v47  ;;  %1275 = vmatpush.msrb.mxu0 %v3226_v4  ;;  %v3737_v47 = vand.u32 4294901760, %v3300_v16 }
  0xb4   :  { %1115 = vmatmul.f32.vlgmr.msra.gmra.mxu1 %v3070_v26  ;;  %1365 = vmatpush.msrb.mxu2 %v3731_v33  ;;  %v3733_v26 = vand.u32 4294901760, %v3226_v4 }
  0xb5   :  { %1316 = vmatpush.msrb.mxu1 %v3131_v40  ;;  %1426 = vmatpush.msrb.mxu3 %v3156_v12  ;;  %v3734_v40 = vand.u32 4294901760, %v3251_v44 }
  0xb6   :  { %1278 = vmatpush.msrb.mxu0 %v3251_v44  ;;  %1369 = vmatpush.msrb.mxu2 %v3732_v38 }
  0xb7   :  { %1318 = vmatpush.msrb.mxu1 %v3156_v12  ;;  %1428 = vmatpush.msrb.mxu3 %v3176_v1 }
  0xb8   :  { %1281 = vmatpush.msrb.mxu0 %v3268_v41  ;;  %1373 = vmatpush.msrb.mxu2 %v3733_v26 }
  0xb9   :  { %1320 = vmatpush.msrb.mxu1 %v3176_v1  ;;  %1430 = vmatpush.msrb.mxu3 %v3184_v28  ;;  %v3736_v1 = vand.u32 4294901760, %v3285_v19 }
  0xba   :  { %1284 = vmatpush.msrb.mxu0 %v3285_v19  ;;  %1377 = vmatpush.msrb.mxu2 %v3734_v40 }
  0xbb   :  { %1322 = vmatpush.msrb.mxu1 %v3184_v28  ;;  %1432 = vmatpush.msrb.mxu3 %v3196_v58 }
  0xbc   :  { %1287 = vmatpush.msrb.mxu0 %v3300_v16  ;;  %1381 = vmatpush.msrb.mxu2 %v3735_v42  ;;  %v134_v54 = vpop.f32.mrf.mxu0 }
  0xbd   :  { %1324 = vmatpush.msrb.mxu1 %v3196_v58  ;;  %1434 = vmatpush.msrb.mxu3 %v3219_v25  ;;  %v3738_v58 = vand.u32 4294901760, %v3315_v57 }
  0xbe   :  { %1290 = vmatpush.msrb.mxu0 %v3315_v57  ;;  %1385 = vmatpush.msrb.mxu2 %v3736_v1 }
  0xbf   :  { %1326 = vmatpush.msrb.mxu1 %v3219_v25  ;;  %1436 = vmatpush.msrb.mxu3 %v3237_v53  ;;  %v3739_v25 = vand.u32 4294901760, %v3328_v62 }
  0xc0   :  { %1293 = vmatpush.msrb.mxu0 %v3328_v62  ;;  %1389 = vmatpush.msrb.mxu2 %v3737_v47 }
  0xc1   :  { %1328 = vmatpush.msrb.mxu1 %v3237_v53  ;;  %1438 = vmatpush.msrb.mxu3 %v3253_v46 }
  0xc2   :  { %1296 = vmatpush.msrb.mxu0 %v3344_v49  ;;  %1393 = vmatpush.msrb.mxu2 %v3738_v58 }
  0xc3   :  { %1330 = vmatpush.msrb.mxu1 %v3253_v46  ;;  %1440 = vmatpush.msrb.mxu3 %v3270_v23 }
  0xc4   :  { %1299 = vmatpush.msrb.mxu0 %v3360_v43  ;;  %1397 = vmatpush.msrb.mxu2 %v3739_v25  ;;  %v1461_v43 = vld [vmem:[%s3631_s1 + $0x8] sm:$0xff] }
  0xc5   :  { %1332 = vmatpush.msrb.mxu1 %v3270_v23  ;;  %1442 = vmatpush.msrb.mxu3 %v3287_v17 }
  0xc6   :  { %1302 = vmatpush.msrb.mxu0 %v3381_v20  ;;  %1401 = vmatpush.msrb.mxu2 %v1228_v36  ;;  %v235_v53 = vpop.f32.mrf.mxu1 }
  0xc7   :  { %1334 = vmatpush.msrb.mxu1 %v3287_v17  ;;  %1444 = vmatpush.msrb.mxu3 %v3302_v45  ;;  %v236_v60 = vadd.f32 %v235_v53, %v134_v54  ;;  %v1530_v53 = vld [vmem:[%s3632_s2] sm:$0xf] }
  0xc8   :  { %1305 = vmatpush.msrb.mxu0 %v3394_v5  ;;  %1405 = vmatpush.msrb.mxu2 %v1234_v2  ;;  %v289_v12 = vpop.f32.mrf.mxu2  ;;  %v328_v4 = vpop.f32.mrf.mxu3 }
  0xc9   :  { %1336 = vmatpush.msrb.mxu1 %v3302_v45  ;;  %1446 = vmatpush.msrb.mxu3 %v3317_v39  ;;  %v290_v63 = vadd.f32 %v289_v12, %v236_v60 }
  0xca   :  { %1308 = vmatpush.msrb.mxu0 %v3408_v34  ;;  %1409 = vmatpush.msrb.mxu2 %v1240_v27 }
  0xcb   :  { %1338 = vmatpush.msrb.mxu1 %v3317_v39  ;;  %1448 = vmatpush.msrb.mxu3 %v3330_v15  ;;  %v329_v28 = vadd.f32 %v328_v4, %v290_v63 }
  0xcc   :  { %1311 = vmatmul.f32.vlgmr.msrb.gmra.mxu0 %v3397_v56  ;;  %1413 = vmatpush.msrb.mxu2 %v1246_v31 }
  0xcd   :  { %1340 = vmatpush.msrb.mxu1 %v3330_v15  ;;  %1450 = vmatpush.msrb.mxu3 %v3352_v18  ;;  %v397_v46 = vpop.f32.mrf.mxu0 }
  0xce   :  { %1417 = vmatpush.msrb.mxu2 %v1252_v37  ;;  %v398_v17 = vadd.f32 %v397_v46, %v329_v28  ;;  %1480 = vmatpush.msra.mxu0 %v1461_v43 }
  0xcf   :  { %1342 = vmatpush.msrb.mxu1 %v3352_v18  ;;  %1452 = vmatpush.msrb.mxu3 %v3368_v22  ;;  %v1460_v18 = vld [vmem:[%s3631_s1] sm:$0xff] }
  0xd0   :  { %1419 = vmatmul.f32.vlgmr.msrb.gmra.mxu2 %v3370_v9  ;;  %v434_v15 = vpop.f32.mrf.mxu1  ;;  %1481 = vmatpush.msra.mxu0 %v1460_v18 }
  0xd1   :  { %1344 = vmatpush.msrb.mxu1 %v3368_v22  ;;  %1454 = vmatpush.msrb.mxu3 %v3383_v61  ;;  %v435_v44 = vadd.f32 %v434_v15, %v398_v17  ;;  %v475_v41 = vpop.f32.mrf.mxu2 }
  0xd2   :  { %1456 = vmatmul.f32.vlgmr.msrb.gmra.mxu3 %v3370_v9 }
  0xd3   :  { %1346 = vmatpush.msrb.mxu1 %v3383_v61  ;;  %v476_v23 = vadd.f32 %v475_v41, %v435_v44 }
  0xd4   :  { %1350 = vmatmul.f32.vlgmr.msrb.gmra.mxu1 %v1153_v21  ;;  %v576_v19 = vpop.f32.mrf.mxu3 }
  0xd5   :  { %v577_v45 = vadd.f32 %v576_v19, %v476_v23  ;;  %2258 = vmatpush.msk.msra.mxu1 %vm1535_vm1, %v1530_v53 }
  0xe3   :  { %v630_v16 = vpop.f32.mrf.mxu0 }
  0xe4   :  { %v631_v39 = vadd.f32 %v630_v16, %v577_v45 }
  0xed   :  { %v669_v57 = vpop.f32.mrf.mxu1  ;;  %v738_v62 = vpop.f32.mrf.mxu2 }
  0xee   :  { %v670_v36 = vadd.f32 %v669_v57, %v631_v39 }
  0xf0   :  { %v739_v2 = vadd.f32 %v738_v62, %v670_v36  ;;  %v775_v49 = vpop.f32.mrf.mxu3 }
  0xf2   :  { %v776_v9 = vadd.f32 %v775_v49, %v739_v2 }
 0x105   :  { %v816_v22 = vpop.f32.mrf.mxu0 }
 0x106   :  { %v817_v61 = vadd.f32 %v816_v22, %v776_v9 }
 0x10f   :  { %v917_v20 = vpop.f32.mrf.mxu1  ;;  %v971_v56 = vpop.f32.mrf.mxu2 }
 0x110   :  { %v918_v5 = vadd.f32 %v917_v20, %v817_v61  ;;  %v1582_v20 = vld [vmem:[%s3634_s4 + $0x20] sm:$0xff] }
 0x111   :  { %v1603_v61 = vand.u32 4294901760, %v1582_v20 }
 0x112   :  { %v972_v55 = vadd.f32 %v971_v56, %v918_v5  ;;  %v1010_v48 = vpop.f32.mrf.mxu3  ;;  %v1578_v5 = vld [vmem:[%s3634_s4] sm:$0xff] }
 0x113   :  { %v1631_v56 = vsub.f32 %v1582_v20, %v1603_v61  ;;  %1604 = vmatpush.msra.mxu2 %v1603_v61  ;;  %1688 = vmatpush.msrb.mxu1 %v1603_v61 }
 0x114   :  { %v1011_v34 = vadd.f32 %v1010_v48, %v972_v55  ;;  %v1605_v55 = vand.u32 4294901760, %v1578_v5 }
 0x115   :  { %v1632_v48 = vand.u32 4294901760, %v1631_v56  ;;  %1663 = vmatpush.msrb.mxu0 %v1631_v56 }
 0x116   :  { %1690 = vmatpush.msrb.mxu1 %v1605_v55  ;;  %1606 = vmatpush.msra.mxu2 %v1605_v55 }
 0x118   :  { %1715 = vmatpush.msrb.mxu2 %v1632_v48 }
 0x127   :  { %v1079_v27 = vpop.f32.mrf.mxu0 }
 0x128   :  { %v1080_v51 = vadd.f32 %v1079_v27, %v1011_v34  ;;  %v1637_v27 = vsub.f32 %v1578_v5, %v1605_v55  ;;  %v1633_v34 = vsub.f32 %v1631_v56, %v1632_v48 }
 0x12a   :  { %1666 = vmatpush.msrb.mxu0 %v1637_v27 }
 0x131   :  { %v1116_v13 = vpop.f32.mrf.mxu1  ;;  %v1157_v31 = vpop.f32.mrf.mxu2 }
 0x132   :  { %v1117_v32 = vadd.f32 %v1116_v13, %v1080_v51  ;;  %v1638_v13 = vand.u32 4294901760, %v1637_v27  ;;  %v1634_v51 = vand.u32 4294901760, %v1633_v34 }
 0x134   :  { %v1158_v21 = vadd.f32 %v1157_v31, %v1117_v32  ;;  %v1258_v30 = vpop.f32.mrf.mxu3  ;;  %v1639_v32 = vsub.f32 %v1637_v27, %v1638_v13  ;;  %1719 = vmatpush.msrb.mxu2 %v1638_v13  ;;  %1635 = vmatpush.msra.mxu3 %v1634_v51 }
 0x136   :  { %v1259_v29 = vadd.f32 %v1258_v30, %v1158_v21  ;;  %v1640_v31 = vand.u32 4294901760, %v1639_v32  ;;  %v1583_v21 = vld [vmem:[%s3634_s4 + $0x28] sm:$0xff] }
 0x138   :  { %1641 = vmatpush.msra.mxu3 %v1640_v31 }
 0x13a   :  { %1740 = vmatpush.msrb.mxu3 %v1603_v61 }
 0x13c   :  { %1742 = vmatpush.msrb.mxu3 %v1605_v55 }
 0x149   :  { %v1312_v14 = vpop.f32.mrf.mxu0 }
 0x14a   :  { %v1313_v37 = vadd.f32 %v1312_v14, %v1259_v29  ;;  %v1762_v14 = vand.u32 4294901760, %v1583_v21 }
 0x151   :  { %v1351_v24 = vpop.f32.mrf.mxu1 }
 0x152   :  { %v1352_v6 = vadd.f32 %v1351_v24, %v1313_v37  ;;  %v1579_v37 = vld [vmem:[%s3634_s4 + $0x8] sm:$0xff]  ;;  %v3562_v24 = vsub.f32 %v1583_v21, %v1762_v14 }
 0x153   :  { %v1420_v52 = vpop.f32.mrf.mxu2 }
 0x154   :  { %v1421_v7 = vadd.f32 %v1420_v52, %v1352_v6  ;;  %v1764_v6 = vand.u32 4294901760, %v1579_v37  ;;  %v1791_v52 = vand.u32 4294901760, %v3562_v24 }
 0x155   :  { %v1457_v10 = vpop.f32.mrf.mxu3 }
 0x156   :  { %v1458_v11 = vadd.f32 %v1457_v10, %v1421_v7  ;;  %v3565_v7 = vsub.f32 %v1579_v37, %v1764_v6  ;;  %v1792_v10 = vsub.f32 %v3562_v24, %v1791_v52 }
 0x158   :  { %2256 = vmatmul.msk.f32.vlgmr.msra.gmra.mxu0 %vm1462_vm0, %v1458_v11  ;;  %v1797_v11 = vand.u32 4294901760, %v3565_v7 }
 0x159   :  { %1763 = vmatpush.msra.mxu0 %v1762_v14 }
 0x15b   :  { %1765 = vmatpush.msra.mxu0 %v1764_v6 }
 0x1d5   :  { %v1483_v0 = vpop.f32.mrf.mxu0 }
 0x1d6   :  { %v1487_v59 = vmul.f32 0.70710677, %v1483_v0  ;;  %v1486_v18 = vmul.f32 0.5, %v1483_v0  ;;  %v1793_v0 = vand.u32 4294901760, %v1792_v10 }
 0x1d8   :  { %v1488_v35 = vmul.f32 %v1487_v59, %v1487_v59 }
 0x1da   :  { %v1489_v3 = vmin.f32 %v1488_v35, 16.0 }
 0x1dc   :  { %v1490_v50 = vmul.f32 2.1237322e-06, %v1489_v3  ;;  %v1501_v8 = vmul.f32 3.8918573e-05, %v1489_v3 }
 0x1de   :  { %v1491_v33 = vadd.f32 0.00028619796, %v1490_v50  ;;  %v1502_v38 = vadd.f32 0.001143296, %v1501_v8 }
 0x1e0   :  { %v1492_v26 = vmul.f32 %v1491_v33, %v1489_v3  ;;  %v1503_v40 = vmul.f32 %v1502_v38, %v1489_v3  ;;  %v1584_v33 = vld [vmem:[%s3634_s4 + $0x30] sm:$0xff] }
 0x1e2   :  { %v1504_v42 = vadd.f32 0.014752088, %v1503_v40  ;;  %v1493_v1 = vadd.f32 0.0036580483, %v1492_v26  ;;  %v1580_v26 = vld [vmem:[%s3634_s4 + $0x10] sm:$0xff] }
 0x1e4   :  { %v1505_v47 = vmul.f32 %v1504_v42, %v1489_v3  ;;  %v1494_v25 = vmul.f32 %v1493_v1, %v1489_v3  ;;  %v1921_v42 = vand.u32 4294901760, %v1584_v33 }
 0x1e6   :  { %v1506_v58 = vadd.f32 0.112945676, %v1505_v47  ;;  %v1495_v12 = vadd.f32 0.05243302, %v1494_v25  ;;  %v1923_v25 = vand.u32 4294901760, %v1580_v26 }
 0x1e8   :  { %v1507_v54 = vmul.f32 %v1506_v58, %v1489_v3  ;;  %v1496_v28 = vmul.f32 %v1495_v12, %v1489_v3 }
 0x1ea   :  { %v1508_v60 = vadd.f32 0.4994258, %v1507_v54  ;;  %v1497_v46 = vadd.f32 0.18741608, %v1496_v28  ;;  %v3576_v54 = vsub.f32 %v1584_v33, %v1921_v42 }
 0x1ec   :  { %v1509_v63 = vmul.f32 %v1508_v60, %v1489_v3  ;;  %v1498_v15 = vmul.f32 %v1497_v46, %v1489_v3  ;;  %v1950_v46 = vand.u32 4294901760, %v3576_v54 }
 0x1ee   :  { %v1510_v4 = vadd.f32 1.0, %v1509_v63  ;;  %v1499_v19 = vadd.f32 1.1283791, %v1498_v15  ;;  %v3578_v63 = vsub.f32 %v1580_v26, %v1923_v25  ;;  %v1585_v15 = vld [vmem:[%s3634_s4 + $0x38] sm:$0xff] }
 0x1f0   :  { %2262 = vrcp.f32 %v1510_v4  ;;  %v1522_v23 = vand.u32 2147483648, %v1510_v4  ;;  %v1520_v45 = vand.u32 2147483647, %v1510_v4  ;;  %vm1516_vm3 = vweird.f32 %v1510_v4 }
 0x1f1   :  { %v1500_v39 = vmul.f32 %v1499_v19, %v1487_v59  ;;  %v1798_v59 = vsub.f32 %v3565_v7, %v1797_v11  ;;  %v1951_v19 = vsub.f32 %v3576_v54, %v1950_v46 }
 0x1f2   :  { %v1523_v57 = vor.u32 1.1754944e-38, %v1522_v23  ;;  %vm1521_vm5 = vcmp.eq.f32.partialorder %v1520_v45, 8.507059e+37  ;;  %v1581_v23 = vld [vmem:[%s3634_s4 + $0x18] sm:$0xff]  ;;  %s2294_s4 = smov [#allocation2]  }
 0x1f3   :  { %v1799_v50 = vand.u32 4294901760, %v1798_v59  ;;  %s2245_s12 = sshll.u32 %s2294_s4, 4  ;;  %s2246_s12 = int_to_ptr.vmem [resolvable:$true] %s2245_s12 }
 0x1f6   :  { %v2263_v17 = vpop.eup %2262 }
 0x1f7   :  { %v1512_v44 = vmul.f32 %v2263_v17, %v1510_v4  ;;  %vm1517_vm2 = vweird.f32 %v2263_v17 }
 0x1f8   :  { %vm1518_vm4 = vmor %vm1516_vm3, %vm1517_vm2 }
 0x1f9   :  { %v1513_v41 = vsub.f32 1.0, %v1512_v44  ;;  %v1956_v44 = vand.u32 4294901760, %v3578_v63 }
 0x1fb   :  { %v1514_v16 = vmul.f32 %v2263_v17, %v1513_v41 }
 0x1fd   :  { %v1515_v43 = vadd.f32 %v2263_v17, %v1514_v16  ;;  %v2080_v16 = vand.u32 4294901760, %v1585_v15 }
 0x1ff   :  { %v1519_v36 = vsel %vm1518_vm4, %v2263_v17, %v1515_v43  ;;  %v1957_v43 = vsub.f32 %v3578_v63, %v1956_v44 }
 0x200   :  { %v1524_v62 = vsel %vm1521_vm5, %v1523_v57, %v1519_v36  ;;  %v2082_v57 = vand.u32 4294901760, %v1581_v23  ;;  %v1952_v36 = vand.u32 4294901760, %v1951_v19 }
 0x201   :  { %v1525_v2 = vmul.f32 %v1524_v62, %v1500_v39  ;;  %v2108_v62 = vsub.f32 %v1585_v15, %v2080_v16 }
 0x203   :  { %v2257_v49 = vclamps-f32 %v1525_v2, 1.0 }
 0x205   :  { %v1528_v22 = vadd.f32 1.0, %v2257_v49  ;;  %v1958_v49 = vand.u32 4294901760, %v1957_v43  ;;  %v3740_v43 = vld [vmem:[#allocation5_spill] sm:$0xff] }
 0x207   :  { %v1529_v9 = vmul.f32 %v1528_v22, %v1486_v18  ;;  %v2114_v18 = vsub.f32 %v1581_v23, %v2082_v57  ;;  %v2109_v22 = vand.u32 4294901760, %v2108_v62 }
 0x209   :  { %2259 = vmatmul.msk.f32.vlgmr.msra.gmra.mxu1 %vm1531_vm6, %v1529_v9  ;;  %v2115_v9 = vand.u32 4294901760, %v2114_v18  ;;  %v2110_v20 = vsub.f32 %v2108_v62, %v2109_v22 }
 0x20a   :  { %1794 = vmatpush.msra.mxu1 %v1793_v0 }
 0x20b   :  { %v2116_v61 = vsub.f32 %v2114_v18, %v2115_v9  ;;  %v2111_v5 = vand.u32 4294901760, %v2110_v20 }
 0x20c   :  { %1800 = vmatpush.msra.mxu1 %v1799_v50 }
 0x20d   :  { %v2117_v56 = vand.u32 4294901760, %v2116_v61 }
 0x286   :  { %v1556_v30 = vpop.f32.mrf.mxu1 }
 0x287   :  { %v2260_v29 = vmul.f32 -1.442695, %v1556_v30 }
 0x289   :  { %2264 = vpow2.f32 %v2260_v29 }
 0x28f   :  { %v2265_v35 = vpop.eup %2264 }
 0x290   :  { %v1562_v3 = vadd.f32 1.0, %v2265_v35 }
 0x292   :  { %2266 = vrcp.f32 %v1562_v3  ;;  %v1574_v1 = vand.u32 2147483648, %v1562_v3  ;;  %v1572_v58 = vand.u32 2147483647, %v1562_v3  ;;  %vm1568_vm8 = vweird.f32 %v1562_v3 }
 0x294   :  { %v1575_v60 = vor.u32 1.1754944e-38, %v1574_v1  ;;  %vm1573_vm10 = vcmp.eq.f32.partialorder %v1572_v58, 8.507059e+37 }
 0x298   :  { %v2267_v8 = vpop.eup %2266 }
 0x299   :  { %v1564_v38 = vmul.f32 %v2267_v8, %v1562_v3  ;;  %vm1569_vm7 = vweird.f32 %v2267_v8 }
 0x29a   :  { %vm1570_vm9 = vmor %vm1568_vm8, %vm1569_vm7 }
 0x29b   :  { %v1565_v40 = vsub.f32 1.0, %v1564_v38 }
 0x29d   :  { %v1566_v47 = vmul.f32 %v2267_v8, %v1565_v40 }
 0x29f   :  { %v1567_v53 = vadd.f32 %v2267_v8, %v1566_v47 }
 0x2a1   :  { %v1571_v12 = vsel %vm1570_vm9, %v2267_v8, %v1567_v53 }
 0x2a2   :  { %v1576_v4 = vsel %vm1573_vm10, %v1575_v60, %v1571_v12 }
 0x2a3   :  { %v1587_v28 = vsel %vm1462_vm0, %v1576_v4, 0 }
 0x2a4   :  { %v3582_v17 = vand.u32 4294901760, %v1587_v28 }
 0x2a6   :  { %1643 = vmatmul.f32.vlgmr.msra.gmra.mxu3 %v3582_v17  ;;  %v3590_v41 = vsub.f32 %v1587_v28, %v3582_v17 }
 0x2a7   :  { %1847 = vmatpush.msra.mxu3 %v1762_v14 }
 0x2a8   :  { %1669 = vmatmul.f32.vlgmr.msrb.gmra.mxu0 %v3590_v41  ;;  %v3598_v45 = vand.u32 4294901760, %v3590_v41 }
 0x2a9   :  { %1849 = vmatpush.msra.mxu3 %v1764_v6  ;;  %1874 = vmatpush.msrb.mxu0 %v1791_v52 }
 0x2aa   :  { %1694 = vmatmul.f32.vlgmr.msrb.gmra.mxu1 %v3598_v45  ;;  %v1610_v39 = vsub.f32 %v3590_v41, %v3598_v45 }
 0x2ab   :  { %1878 = vmatpush.msrb.mxu0 %v1797_v11  ;;  %1899 = vmatpush.msrb.mxu1 %v1762_v14 }
 0x2ac   :  { %v1611_v2 = vand.u32 4294901760, %v1610_v39 }
 0x2ad   :  { %1901 = vmatpush.msrb.mxu1 %v1764_v6 }
 0x2ae   :  { %1612 = vmatmul.f32.vlgmr.msra.gmra.mxu2 %v1611_v2  ;;  %1744 = vmatmul.f32.vlgmr.msrb.gmra.mxu3 %v3582_v17 }
 0x2af   :  { %1822 = vmatpush.msra.mxu2 %v3562_v24  ;;  %1953 = vmatpush.msrb.mxu3 %v1952_v36 }
 0x2b0   :  { %1771 = vmatmul.f32.vlgmr.msra.gmra.mxu0 %v1611_v2 }
 0x2b1   :  { %1825 = vmatpush.msra.mxu2 %v3565_v7  ;;  %1959 = vmatpush.msrb.mxu3 %v1958_v49 }
 0x2b2   :  { %1802 = vmatmul.f32.vlgmr.msra.gmra.mxu1 %v3582_v17  ;;  %1981 = vmatpush.msra.mxu0 %v3576_v54 }
 0x2b3   :  { %2006 = vmatpush.msra.mxu1 %v1921_v42 }
 0x2b4   :  { %1984 = vmatpush.msra.mxu0 %v3578_v63 }
 0x2b5   :  { %2008 = vmatpush.msra.mxu1 %v1923_v25 }
 0x2b6   :  { %1721 = vmatmul.f32.vlgmr.msrb.gmra.mxu2 %v3582_v17  ;;  %1853 = vmatmul.f32.vlgmr.msra.gmra.mxu3 %v3598_v45 }
 0x2b7   :  { %1922 = vmatpush.msrb.mxu2 %v1921_v42  ;;  %2058 = vmatpush.msra.mxu3 %v1921_v42 }
 0x2b8   :  { %1880 = vmatmul.f32.vlgmr.msrb.gmra.mxu0 %v3582_v17 }
 0x2b9   :  { %1924 = vmatpush.msrb.mxu2 %v1923_v25  ;;  %2060 = vmatpush.msra.mxu3 %v1923_v25 }
 0x2ba   :  { %1903 = vmatmul.f32.vlgmr.msrb.gmra.mxu1 %v3582_v17  ;;  %2081 = vmatpush.msrb.mxu0 %v2080_v16 }
 0x2bb   :  { %2112 = vmatpush.msrb.mxu1 %v2111_v5 }
 0x2bc   :  { %2083 = vmatpush.msrb.mxu0 %v2082_v57 }
 0x2bd   :  { %2118 = vmatpush.msrb.mxu1 %v2117_v56 }
 0x2be   :  { %1828 = vmatmul.f32.vlgmr.msra.gmra.mxu2 %v3590_v41  ;;  %1961 = vmatmul.f32.vlgmr.msrb.gmra.mxu3 %v3582_v17 }
 0x2bf   :  { %2033 = vmatpush.msra.mxu2 %v1950_v46  ;;  %2165 = vmatpush.msrb.mxu3 %v2080_v16 }
 0x2c0   :  { %1987 = vmatmul.f32.vlgmr.msra.gmra.mxu0 %v3590_v41 }
 0x2c1   :  { %2037 = vmatpush.msra.mxu2 %v1956_v44  ;;  %2167 = vmatpush.msrb.mxu3 %v2082_v57 }
 0x2c2   :  { %2012 = vmatmul.f32.vlgmr.msra.gmra.mxu1 %v3598_v45  ;;  %2192 = vmatpush.msra.mxu0 %v2109_v22 }
 0x2c3   :  { %2217 = vmatpush.msra.mxu1 %v2080_v16 }
 0x2c4   :  { %2196 = vmatpush.msra.mxu0 %v2115_v9 }
 0x2c5   :  { %2219 = vmatpush.msra.mxu1 %v2082_v57 }
 0x2c6   :  { %1930 = vmatmul.f32.vlgmr.msrb.gmra.mxu2 %v1611_v2  ;;  %2062 = vmatmul.f32.vlgmr.msra.gmra.mxu3 %v3582_v17 }
 0x2c7   :  { %2140 = vmatpush.msrb.mxu2 %v2108_v62 }
 0x2c8   :  { %2089 = vmatmul.f32.vlgmr.msrb.gmra.mxu0 %v1611_v2 }
 0x2c9   :  { %2143 = vmatpush.msrb.mxu2 %v2114_v18 }
 0x2ca   :  { %2120 = vmatmul.f32.vlgmr.msrb.gmra.mxu1 %v3582_v17 }
 0x2ce   :  { %2039 = vmatmul.f32.vlgmr.msra.gmra.mxu2 %v3582_v17  ;;  %2171 = vmatmul.f32.vlgmr.msrb.gmra.mxu3 %v3598_v45 }
 0x2d0   :  { %2198 = vmatmul.f32.vlgmr.msra.gmra.mxu0 %v3582_v17 }
 0x2d2   :  { %2221 = vmatmul.f32.vlgmr.msra.gmra.mxu1 %v3582_v17 }
 0x2d6   :  { %2146 = vmatmul.f32.vlgmr.msrb.gmra.mxu2 %v3590_v41 }
 0x325   :  { %v1670_v48 = vpop.f32.mrf.mxu0 }
 0x327   :  { %v1695_v27 = vpop.f32.mrf.mxu1 }
 0x329   :  { %v1644_v55 = vpop.f32.mrf.mxu3 }
 0x32d   :  { %v1772_v51 = vpop.f32.mrf.mxu0 }
 0x32f   :  { %v1803_v32 = vpop.f32.mrf.mxu1 }
 0x330   :  { %v1804_v7 = vadd.f32 %v1803_v32, %v1772_v51 }
 0x331   :  { %v1613_v34 = vpop.f32.mrf.mxu2  ;;  %v1745_v13 = vpop.f32.mrf.mxu3 }
 0x332   :  { %v1645_v3 = vadd.f32 %v1644_v55, %v1613_v34 }
 0x334   :  { %v1671_v38 = vadd.f32 %v1670_v48, %v1645_v3 }
 0x335   :  { %v1881_v30 = vpop.f32.mrf.mxu0 }
 0x336   :  { %v1696_v53 = vadd.f32 %v1695_v27, %v1671_v38 }
 0x337   :  { %v1904_v14 = vpop.f32.mrf.mxu1 }
 0x339   :  { %v1722_v31 = vpop.f32.mrf.mxu2  ;;  %v1854_v21 = vpop.f32.mrf.mxu3 }
 0x33a   :  { %v1723_v63 = vadd.f32 %v1722_v31, %v1696_v53 }
 0x33c   :  { %v1746_v44 = vadd.f32 %v1745_v13, %v1723_v63 }
 0x33d   :  { %v1988_v24 = vpop.f32.mrf.mxu0 }
 0x33f   :  { %v2013_v52 = vpop.f32.mrf.mxu1 }
 0x341   :  { %v1829_v29 = vpop.f32.mrf.mxu2  ;;  %v1962_v37 = vpop.f32.mrf.mxu3 }
 0x342   :  { %v1830_v10 = vadd.f32 %v1829_v29, %v1804_v7 }
 0x344   :  { %v1855_v50 = vadd.f32 %v1854_v21, %v1830_v10 }
 0x345   :  { %v2090_v35 = vpop.f32.mrf.mxu0 }
 0x346   :  { %v1882_v26 = vadd.f32 %v1881_v30, %v1855_v50 }
 0x347   :  { %v2121_v33 = vpop.f32.mrf.mxu1 }
 0x348   :  { %v2122_v40 = vadd.f32 %v2121_v33, %v2090_v35  ;;  %v1905_v54 = vadd.f32 %v1904_v14, %v1882_v26 }
 0x349   :  { %v1931_v6 = vpop.f32.mrf.mxu2  ;;  %v2063_v0 = vpop.f32.mrf.mxu3 }
 0x34a   :  { %v1963_v11 = vadd.f32 %v1962_v37, %v1931_v6  ;;  %v2229_v17 = vrot.slane %v1905_v54, 6 }
 0x34c   :  { %v1989_v8 = vadd.f32 %v1988_v24, %v1963_v11  ;;  %v2233_v19 = vsel %vm2232_vm11, %v1746_v44, %v2229_v17 }
 0x34d   :  { %v2199_v12 = vpop.f32.mrf.mxu0 }
 0x34e   :  { %v2014_v42 = vadd.f32 %v2013_v52, %v1989_v8 }
 0x34f   :  { %v2222_v46 = vpop.f32.mrf.mxu1 }
 0x351   :  { %v2040_v59 = vpop.f32.mrf.mxu2  ;;  %v2172_v25 = vpop.f32.mrf.mxu3 }
 0x352   :  { %v2041_v47 = vadd.f32 %v2040_v59, %v2014_v42 }
 0x354   :  { %v2064_v4 = vadd.f32 %v2063_v0, %v2041_v47 }
 0x356   :  { %v2230_v41 = vrot.slane %v2064_v4, 4 }
 0x359   :  { %v2147_v1 = vpop.f32.mrf.mxu2 }
 0x35a   :  { %v2148_v58 = vadd.f32 %v2147_v1, %v2122_v40 }
 0x35c   :  { %v2173_v60 = vadd.f32 %v2172_v25, %v2148_v58 }
 0x35e   :  { %v2200_v28 = vadd.f32 %v2199_v12, %v2173_v60 }
 0x360   :  { %v2223_v15 = vadd.f32 %v2222_v46, %v2200_v28 }
 0x362   :  { %v2231_v23 = vrot.slane %v2223_v15, 2 }
 0x364   :  { %v2235_v16 = vsel %vm2234_vm12, %v2230_v41, %v2231_v23 }
 0x365   :  { %v2236_v45 = vsel %vm1535_vm1, %v2233_v19, %v2235_v16 }
 0x366   :  { %v2238_v57 = vmul.f32 %v2236_v45, %v3740_v43 }
 0x368   :  { %2239 = vst [vmem:[#allocation2] sm:$0xff] %v2238_v57 }
 0x369   :  { %2250 = dma.vmem_to_hbm [thread:$0]  %s2246_s12, 128, %s2248_s15, [#allocation3]  }
 0x36a   :  { %2292 = dma.done.wait [#allocation3], 128  }
 0x36b   :  { %2293 = vsyncadd [#allocation3], 4294967168 }
 0x36c   :  { %2255 = vsyncpa [#allocation3], 1 }

</bundles_post_ra>
